<compile_context>
chip_gen: v5e
topology: v5e:2x2
jax: 0.10.0
libtpu: 0.0.40
codegen_flags: <defaults>
</compile_context>

<pallas_src>
import functools

import jax
import jax.numpy as jnp
from jax.experimental import pallas as pl
from jax.experimental.pallas import tpu as pltpu


def _final_patch_expand_kernel(x_ref, w_ref, wsum_ref, seg_ref, segt_ref,
                               gamma_ref, beta_ref, o_ref,
                               *, th, w_cols, dim, eps):
    """One grid step: all 16 expanded tokens for `th` image rows x `w_cols` columns.

    x_ref:     (th*w_cols, dim)       activation tile
    w_ref:     (4, dim, 4*dim)        expand weight grouped by p1 (resident)
    wsum_ref:  (4, dim, 4)            per-(p1, chunk) column sums of w (mean from x)
    seg_ref:   (4*dim, 4)             0/1: lane j -> LN chunk j // dim (sum-of-squares)
    segt_ref:  (4, 4*dim)             transpose of seg (MXU broadcast of chunk stats)
    gamma_ref: (1, 4*dim)             LayerNorm gamma, tiled over the 4 p2 chunks
    beta_ref:  (1, 4*dim)             LayerNorm beta,  tiled over the 4 p2 chunks
    o_ref:     (th, 4, w_cols, 4*dim) pixel-shuffled output slab (axis 1 == p1)
    """
    x = x_ref[...]
    seg = seg_ref[...]
    segt = segt_ref[...]
    gamma = gamma_ref[...]
    beta = beta_ref[...]
    inv_n = 1.0 / dim

    for g in range(4):  # static unroll over p1 groups; one x tile feeds all four
        # (tm, dim) @ (dim, 4*dim) -> (tm, 4*dim), f32 accumulation on the MXU.
        y = jnp.dot(x, w_ref[g], preferred_element_type=jnp.float32)
        # Per-chunk sum straight from x (w_sum = per-chunk column sums of the weight):
        # mathematically identical to summing y per chunk, ~1/4 the MXU LHS pushes.
        s1 = jnp.dot(x, wsum_ref[g], preferred_element_type=jnp.float32)    # (tm, 4)
        s2 = jnp.dot(y * y, seg, preferred_element_type=jnp.float32)        # (tm, 4)
        mean = s1 * inv_n
        # Clamp guards the one-pass E[y^2]-mean^2 formulation against cancellation.
        var = jnp.maximum(s2 * inv_n - mean * mean, 0.0)
        rstd = jax.lax.rsqrt(var + eps)
        # Broadcast per-chunk stats back across lanes with tiny MXU matmuls
        # (no cross-lane concat/shuffle work on the VALU/XLU).
        mean_b = jnp.dot(mean, segt, preferred_element_type=jnp.float32)    # (tm, 4*dim)
        rstd_b = jnp.dot(rstd, segt, preferred_element_type=jnp.float32)    # (tm, 4*dim)
        out = (y - mean_b) * rstd_b * gamma + beta
        # Leading-axis split only; lane axis untouched.  Slab (th, 1, W, 4*dim) lands
        # at out[:, g] of the (B*H, 4, W, 4*dim) buffer, which is bit-identical to the
        # final (B, 4H, 4W, dim) == (B, 16*H*W, dim) row-major layout.
        o_ref[:, g:g + 1, :, :] = out.reshape(th, 1, w_cols, 4 * dim).astype(o_ref.dtype)


def prepare_final_patch_expand_constants(w, gamma, beta, dim, *,
                                         compute_dtype=jnp.bfloat16):
    """One-time operand prep; hoist out of the per-call hot path (cache per weight)."""
    # Linear weight columns are ordered (p1, p2, c); group by p1 -> (4, dim, 4*dim).
    wr = w.reshape(dim, 4, 4 * dim).transpose(1, 0, 2)
    if compute_dtype is not None:
        wr = wr.astype(compute_dtype)          # bf16 MXU operands; accumulation stays f32
    # Per-chunk column sums so the per-chunk mean is computed straight from x.
    w_sum = wr.astype(jnp.float32).reshape(4, dim, 4, dim).sum(axis=-1)      # (4, dim, 4)
    w_sum = w_sum.astype(wr.dtype)
    lane = jnp.arange(4 * dim, dtype=jnp.int32)
    chunk = jnp.arange(4, dtype=jnp.int32)
    seg = (lane[:, None] // dim == chunk[None, :]).astype(jnp.float32)       # (4*dim, 4)
    segt = (chunk[:, None] == lane[None, :] // dim).astype(jnp.float32)      # (4, 4*dim)
    gamma4 = jnp.tile(gamma.astype(jnp.float32).reshape(1, dim), (1, 4))     # (1, 4*dim)
    beta4 = jnp.tile(beta.astype(jnp.float32).reshape(1, dim), (1, 4))       # (1, 4*dim)
    return wr, w_sum, seg, segt, gamma4, beta4


def _vmem_plan(vmem_limit_bytes):
    """Derive a safe vmem_limit (<= ~75% of physical VMEM) and a matching tile budget."""
    if vmem_limit_bytes is None:
        try:
            cap = int(pltpu.get_tpu_info().vmem_capacity_bytes)
        except Exception:
            cap = 64 * 1024 * 1024              # conservative fallback (v7x per-core VMEM)
        vmem_limit_bytes = min(cap * 3 // 4, 96 * 1024 * 1024)
    vmem_budget_bytes = vmem_limit_bytes * 4 // 5
    return vmem_limit_bytes, vmem_budget_bytes


def _choose_row_tile(bh, w_cols, dim, in_bytes, out_bytes, resident_bytes,
                     target_tokens, vmem_budget_bytes, row_align):
    """Largest th (image rows of w_cols tokens each) dividing bh that fits the budget."""
    # Per token: double-buffered x tile + double-buffered 16x output tile + f32 temps.
    per_token = 2 * dim * in_bytes + 32 * dim * out_bytes + 64 * dim
    budget = max(vmem_budget_bytes - resident_bytes, per_token * w_cols)
    cap_rows = max(1, min(target_tokens, budget // per_token) // w_cols)
    if bh >= 2:
        # Keep >= 2 row tiles so the "parallel" grid axis splits across both v7x cores.
        cap_rows = max(1, min(cap_rows, bh // 2))
    divisors = [d for d in range(1, bh + 1) if bh % d == 0]
    good = [d for d in divisors if d <= cap_rows and (d * w_cols) % row_align == 0]
    if good:
        return max(good)
    # No aligned divisor within budget: take the smallest aligned one (minimal overshoot),
    # else the full extent (block == full array dims is always a legal BlockSpec).
    aligned = [d for d in divisors if (d * w_cols) % row_align == 0]
    return min(aligned) if aligned else bh


def final_patch_expand_x4(x, w, gamma, beta, input_resolution, dim, *,
                          eps=1e-5,
                          compute_dtype=jnp.bfloat16,   # MXU operand dtype (None = keep x dtype)
                          out_dtype=None,               # default x.dtype; pass bfloat16 to halve writeback
                          target_block_tokens=2048,
                          vmem_limit_bytes=None,
                          constants=None):
    """x: (B, H*W, dim) -> (B, 16*H*W, dim).  Matches FinalPatchExpand_X4.forward."""
    H, W = input_resolution
    B, L, C = x.shape
    assert L == H * W, "input feature has wrong size"
    assert C == dim, "channel dim mismatch"
    BH = B * H
    out_dtype = out_dtype if out_dtype is not None else x.dtype

    if constants is None:
        constants = prepare_final_patch_expand_constants(
            w, gamma, beta, dim, compute_dtype=compute_dtype)
    wr, w_sum, seg, segt, gamma4, beta4 = constants

    x2 = x.reshape(BH * W, dim)
    if compute_dtype is not None and x2.dtype != compute_dtype:
        x2 = x2.astype(compute_dtype)

    in_bytes = jnp.dtype(x2.dtype).itemsize
    out_bytes = jnp.dtype(out_dtype).itemsize
    vmem_limit, vmem_budget = _vmem_plan(vmem_limit_bytes)
    resident = 2 * sum(int(a.size) * jnp.dtype(a.dtype).itemsize
                       for a in (wr, w_sum, seg, segt, gamma4, beta4))
    row_align = max(8, 32 // in_bytes)          # 8 rows for f32, 16 for bf16 (sublane packing)
    th = _choose_row_tile(BH, W, dim, in_bytes, out_bytes, resident,
                          target_block_tokens, vmem_budget, row_align)
    tm = th * W
    grid = (BH // th,)

    out5 = pl.pallas_call(
        functools.partial(_final_patch_expand_kernel,
                          th=th, w_cols=W, dim=dim, eps=eps),
        out_shape=jax.ShapeDtypeStruct((BH, 4, W, 4 * dim), out_dtype),
        grid_spec=pltpu.PrefetchScalarGridSpec(
            num_scalar_prefetch=0,
            grid=grid,
            in_specs=[
                pl.BlockSpec((tm, dim), lambda r: (r, 0)),            # x tile
                pl.BlockSpec((4, dim, 4 * dim), lambda r: (0, 0, 0)),  # expand weight (resident)
                pl.BlockSpec((4, dim, 4), lambda r: (0, 0, 0)),        # per-chunk column sums
                pl.BlockSpec((4 * dim, 4), lambda r: (0, 0)),          # segment matrix
                pl.BlockSpec((4, 4 * dim), lambda r: (0, 0)),          # segment matrix (transposed)
                pl.BlockSpec((1, 4 * dim), lambda r: (0, 0)),          # gamma (x4 tiled)
                pl.BlockSpec((1, 4 * dim), lambda r: (0, 0)),          # beta  (x4 tiled)
            ],
            # Fused pixel shuffle: tile r writes out[r*th:(r+1)*th, :, :, :].
            out_specs=pl.BlockSpec((th, 4, W, 4 * dim), lambda r: (r, 0, 0, 0)),
        ),
        compiler_params=pltpu.CompilerParams(
            dimension_semantics=("parallel",),
            vmem_limit_bytes=vmem_limit,
        ),
    )(x2, wr, w_sum, seg, segt, gamma4, beta4)

    # Free reshape: (B*H, 4, W, 4*dim) is already the final row-major layout.
    return out5.reshape(B, 16 * H * W, dim)


class FinalPatchExpandX4:
    """Caches the pre-processed weights so per-call operand prep is hoisted."""

    def __init__(self, w, gamma, beta, input_resolution, dim, *, eps=1e-5,
                 compute_dtype=jnp.bfloat16, out_dtype=None,
                 target_block_tokens=2048, vmem_limit_bytes=None):
        self.input_resolution = input_resolution
        self.dim = dim
        self.eps = eps
        self.compute_dtype = compute_dtype
        self.out_dtype = out_dtype
        self.target_block_tokens = target_block_tokens
        self.vmem_limit_bytes = vmem_limit_bytes
        self.constants = jax.block_until_ready(
            prepare_final_patch_expand_constants(w, gamma, beta, dim,
                                                 compute_dtype=compute_dtype))

    def __call__(self, x):
        return final_patch_expand_x4(
            x, None, None, None, self.input_resolution, self.dim,
            eps=self.eps, compute_dtype=self.compute_dtype, out_dtype=self.out_dtype,
            target_block_tokens=self.target_block_tokens,
            vmem_limit_bytes=self.vmem_limit_bytes, constants=self.constants)


def _reference(x, w, gamma, beta, input_resolution, dim, eps=1e-5):
    H, W = input_resolution
    B = x.shape[0]
    y = jnp.einsum("blc,cd->bld", x, w)
    y = y.reshape(B, H, W, 4, 4, dim).transpose(0, 1, 3, 2, 4, 5).reshape(B, 16 * H * W, dim)
    mean = jnp.mean(y, axis=-1, keepdims=True)
    var = jnp.mean((y - mean) ** 2, axis=-1, keepdims=True)
    return (y - mean) * jax.lax.rsqrt(var + eps) * gamma + beta


if __name__ == "__main__":
    key = jax.random.PRNGKey(0)

    def make_inputs(k, B, H, W, dim):
        kx, kw, kg, kb = jax.random.split(k, 4)
        x = jax.random.normal(kx, (B, H * W, dim), dtype=jnp.float32)
        # nn.Linear(dim, 16*dim, bias=False): weight used as (dim, 16*dim) on the right.
        w = jax.random.normal(kw, (dim, 16 * dim), dtype=jnp.float32) * 0.05
        gamma = 1.0 + 0.1 * jax.random.normal(kg, (dim,), dtype=jnp.float32)
        beta = 0.1 * jax.random.normal(kb, (dim,), dtype=jnp.float32)
        return x, w, gamma, beta

    k1, k2 = jax.random.split(key)

    # --- config 1: strict f32 check --------------------------------------------------
    B, H, W, dim = 2, 8, 8, 32
    x, w, gamma, beta = make_inputs(k1, B, H, W, dim)
    ref = _reference(x, w, gamma, beta, (H, W), dim)

    out = final_patch_expand_x4(x, w, gamma, beta, (H, W), dim, compute_dtype=None)
    out = jax.block_until_ready(out)
    assert out.shape == (B, 16 * H * W, dim)
    assert jnp.allclose(out, ref, atol=1e-4, rtol=1e-4), "mismatch vs reference (f32)"

    # --- config 1, fast path: bf16 MXU operands + bf16 output (halves HBM writeback) -
    mod = FinalPatchExpandX4(w, gamma, beta, (H, W), dim, out_dtype=jnp.bfloat16)
    out_fast = jax.block_until_ready(mod(x))
    assert out_fast.shape == (B, 16 * H * W, dim)
    assert out_fast.dtype == jnp.bfloat16
    assert float(jnp.max(jnp.abs(out_fast.astype(jnp.float32) - ref))) < 8e-2, \
        "mismatch vs reference (bf16 fast path)"

    # --- config 2: different resolution / dim (multi N-tile MXU path, small B*H) -----
    B2, H2, W2, dim2 = 1, 4, 8, 96
    x2, w2, g2, b2 = make_inputs(k2, B2, H2, W2, dim2)
    ref2 = _reference(x2, w2, g2, b2, (H2, W2), dim2)
    out2 = final_patch_expand_x4(x2, w2, g2, b2, (H2, W2), dim2, compute_dtype=None)
    out2 = jax.block_until_ready(out2)
    assert jnp.allclose(out2, ref2, atol=1e-4, rtol=1e-4), "mismatch vs reference (cfg2)"

    print("KERNEL_OK")
</pallas_src>

<mosaic_0001>
module attributes {stable_mosaic.version = 11 : i64} {
  func.func @_final_patch_expand_kernel(%arg0: i32, %arg1: memref<64x32xf32, #tpu.memory_space<vmem>>, %arg2: memref<4x32x128xf32, #tpu.memory_space<vmem>>, %arg3: memref<4x32x4xf32, #tpu.memory_space<vmem>>, %arg4: memref<128x4xf32, #tpu.memory_space<vmem>>, %arg5: memref<4x128xf32, #tpu.memory_space<vmem>>, %arg6: memref<1x128xf32, #tpu.memory_space<vmem>>, %arg7: memref<1x128xf32, #tpu.memory_space<vmem>>, %arg8: memref<8x4x8x128xf32, #tpu.memory_space<vmem>>) attributes {dimension_semantics = [#tpu.dimension_semantics<parallel>], iteration_bounds = array<i64: 2>, scalar_prefetch = 0 : i64, scratch_operands = 0 : i64, tpu.core_type = #tpu.core_type<tc>, window_params = [{transform_indices = @transform_0, window_bounds = array<i64: 64, 32>}, {pipeline_mode = #tpu.pipeline_mode<synchronous>, transform_indices = @transform_1, window_bounds = array<i64: 4, 32, 128>}, {pipeline_mode = #tpu.pipeline_mode<synchronous>, transform_indices = @transform_2, window_bounds = array<i64: 4, 32, 4>}, {pipeline_mode = #tpu.pipeline_mode<synchronous>, transform_indices = @transform_3, window_bounds = array<i64: 128, 4>}, {pipeline_mode = #tpu.pipeline_mode<synchronous>, transform_indices = @transform_4, window_bounds = array<i64: 4, 128>}, {pipeline_mode = #tpu.pipeline_mode<synchronous>, transform_indices = @transform_5, window_bounds = array<i64: 1, 128>}, {pipeline_mode = #tpu.pipeline_mode<synchronous>, transform_indices = @transform_6, window_bounds = array<i64: 1, 128>}, {transform_indices = @transform_7, window_bounds = array<i64: 8, 4, 8, 128>}]} {
    %c0 = arith.constant 0 : index
    %c0_0 = arith.constant 0 : index
    %0 = vector.load %arg1[%c0, %c0_0] : memref<64x32xf32, #tpu.memory_space<vmem>>, vector<64x32xf32>
    %c0_1 = arith.constant 0 : index
    %c0_2 = arith.constant 0 : index
    %1 = vector.load %arg4[%c0_1, %c0_2] : memref<128x4xf32, #tpu.memory_space<vmem>>, vector<128x4xf32>
    %c0_3 = arith.constant 0 : index
    %c0_4 = arith.constant 0 : index
    %2 = vector.load %arg5[%c0_3, %c0_4] : memref<4x128xf32, #tpu.memory_space<vmem>>, vector<4x128xf32>
    %c0_5 = arith.constant 0 : index
    %c0_6 = arith.constant 0 : index
    %3 = vector.load %arg6[%c0_5, %c0_6] : memref<1x128xf32, #tpu.memory_space<vmem>>, vector<1x128xf32>
    %c0_7 = arith.constant 0 : index
    %c0_8 = arith.constant 0 : index
    %4 = vector.load %arg7[%c0_7, %c0_8] : memref<1x128xf32, #tpu.memory_space<vmem>>, vector<1x128xf32>
    %c0_9 = arith.constant 0 : index
    %c0_10 = arith.constant 0 : index
    %c0_11 = arith.constant 0 : index
    %5 = vector.load %arg2[%c0_9, %c0_10, %c0_11] : memref<4x32x128xf32, #tpu.memory_space<vmem>>, vector<1x32x128xf32>
    %6 = vector.shape_cast %5 : vector<1x32x128xf32> to vector<32x128xf32>
    %cst = arith.constant dense<0.000000e+00> : vector<64x128xf32>
    %7 = tpu.matmul %0, %6, %cst {dimension_numbers = #tpu.dot_dimension_numbers<[1], [0], [0], [1], [0, 0, 1, 1], [], []>} : vector<64x32xf32>, vector<32x128xf32>, vector<64x128xf32> -> vector<64x128xf32>
    %c0_12 = arith.constant 0 : index
    %c0_13 = arith.constant 0 : index
    %c0_14 = arith.constant 0 : index
    %8 = vector.load %arg3[%c0_12, %c0_13, %c0_14] : memref<4x32x4xf32, #tpu.memory_space<vmem>>, vector<1x32x4xf32>
    %9 = vector.shape_cast %8 : vector<1x32x4xf32> to vector<32x4xf32>
    %cst_15 = arith.constant dense<0.000000e+00> : vector<64x4xf32>
    %10 = tpu.matmul %0, %9, %cst_15 {dimension_numbers = #tpu.dot_dimension_numbers<[1], [0], [0], [1], [0, 0, 1, 1], [], []>} : vector<64x32xf32>, vector<32x4xf32>, vector<64x4xf32> -> vector<64x4xf32>
    %11 = arith.mulf %7, %7 : vector<64x128xf32>
    %cst_16 = arith.constant dense<0.000000e+00> : vector<64x4xf32>
    %12 = tpu.matmul %11, %1, %cst_16 {dimension_numbers = #tpu.dot_dimension_numbers<[1], [0], [0], [1], [0, 0, 1, 1], [], []>} : vector<64x128xf32>, vector<128x4xf32>, vector<64x4xf32> -> vector<64x4xf32>
    %cst_17 = arith.constant 3.125000e-02 : f32
    %13 = vector.broadcast %cst_17 : f32 to vector<64x4xf32>
    %14 = arith.mulf %10, %13 : vector<64x4xf32>
    %cst_18 = arith.constant 3.125000e-02 : f32
    %15 = vector.broadcast %cst_18 : f32 to vector<64x4xf32>
    %16 = arith.mulf %12, %15 : vector<64x4xf32>
    %17 = arith.mulf %14, %14 : vector<64x4xf32>
    %18 = arith.subf %16, %17 : vector<64x4xf32>
    %cst_19 = arith.constant 0.000000e+00 : f32
    %19 = vector.broadcast %cst_19 : f32 to vector<64x4xf32>
    %20 = arith.maximumf %18, %19 : vector<64x4xf32>
    %cst_20 = arith.constant 9.99999974E-6 : f32
    %21 = vector.broadcast %cst_20 : f32 to vector<64x4xf32>
    %22 = arith.addf %20, %21 : vector<64x4xf32>
    %23 = math.rsqrt %22 : vector<64x4xf32>
    %cst_21 = arith.constant dense<0.000000e+00> : vector<64x128xf32>
    %24 = tpu.matmul %14, %2, %cst_21 {dimension_numbers = #tpu.dot_dimension_numbers<[1], [0], [0], [1], [0, 0, 1, 1], [], []>} : vector<64x4xf32>, vector<4x128xf32>, vector<64x128xf32> -> vector<64x128xf32>
    %cst_22 = arith.constant dense<0.000000e+00> : vector<64x128xf32>
    %25 = tpu.matmul %23, %2, %cst_22 {dimension_numbers = #tpu.dot_dimension_numbers<[1], [0], [0], [1], [0, 0, 1, 1], [], []>} : vector<64x4xf32>, vector<4x128xf32>, vector<64x128xf32> -> vector<64x128xf32>
    %26 = arith.subf %7, %24 : vector<64x128xf32>
    %27 = arith.mulf %26, %25 : vector<64x128xf32>
    %28 = vector.broadcast %3 : vector<1x128xf32> to vector<64x128xf32>
    %29 = arith.mulf %27, %28 : vector<64x128xf32>
    %30 = vector.broadcast %4 : vector<1x128xf32> to vector<64x128xf32>
    %31 = arith.addf %29, %30 : vector<64x128xf32>
    %32 = vector.shape_cast %31 : vector<64x128xf32> to vector<8x1x8x128xf32>
    %c0_23 = arith.constant 0 : index
    %c0_24 = arith.constant 0 : index
    %c0_25 = arith.constant 0 : index
    %c0_26 = arith.constant 0 : index
    %33 = vector.load %arg8[%c0_23, %c0_24, %c0_25, %c0_26] : memref<8x4x8x128xf32, #tpu.memory_space<vmem>>, vector<8x1x8x128xf32>
    tpu.vector_store %arg8[%c0_23, %c0_24, %c0_25, %c0_26], %32 {strides = array<i32>} : memref<8x4x8x128xf32, #tpu.memory_space<vmem>>, vector<8x1x8x128xf32>,
    %c1 = arith.constant 1 : index
    %c0_27 = arith.constant 0 : index
    %c0_28 = arith.constant 0 : index
    %34 = vector.load %arg2[%c1, %c0_27, %c0_28] : memref<4x32x128xf32, #tpu.memory_space<vmem>>, vector<1x32x128xf32>
    %35 = vector.shape_cast %34 : vector<1x32x128xf32> to vector<32x128xf32>
    %cst_29 = arith.constant dense<0.000000e+00> : vector<64x128xf32>
    %36 = tpu.matmul %0, %35, %cst_29 {dimension_numbers = #tpu.dot_dimension_numbers<[1], [0], [0], [1], [0, 0, 1, 1], [], []>} : vector<64x32xf32>, vector<32x128xf32>, vector<64x128xf32> -> vector<64x128xf32>
    %c1_30 = arith.constant 1 : index
    %c0_31 = arith.constant 0 : index
    %c0_32 = arith.constant 0 : index
    %37 = vector.load %arg3[%c1_30, %c0_31, %c0_32] : memref<4x32x4xf32, #tpu.memory_space<vmem>>, vector<1x32x4xf32>
    %38 = vector.shape_cast %37 : vector<1x32x4xf32> to vector<32x4xf32>
    %cst_33 = arith.constant dense<0.000000e+00> : vector<64x4xf32>
    %39 = tpu.matmul %0, %38, %cst_33 {dimension_numbers = #tpu.dot_dimension_numbers<[1], [0], [0], [1], [0, 0, 1, 1], [], []>} : vector<64x32xf32>, vector<32x4xf32>, vector<64x4xf32> -> vector<64x4xf32>
    %40 = arith.mulf %36, %36 : vector<64x128xf32>
    %cst_34 = arith.constant dense<0.000000e+00> : vector<64x4xf32>
    %41 = tpu.matmul %40, %1, %cst_34 {dimension_numbers = #tpu.dot_dimension_numbers<[1], [0], [0], [1], [0, 0, 1, 1], [], []>} : vector<64x128xf32>, vector<128x4xf32>, vector<64x4xf32> -> vector<64x4xf32>
    %cst_35 = arith.constant 3.125000e-02 : f32
    %42 = vector.broadcast %cst_35 : f32 to vector<64x4xf32>
    %43 = arith.mulf %39, %42 : vector<64x4xf32>
    %cst_36 = arith.constant 3.125000e-02 : f32
    %44 = vector.broadcast %cst_36 : f32 to vector<64x4xf32>
    %45 = arith.mulf %41, %44 : vector<64x4xf32>
    %46 = arith.mulf %43, %43 : vector<64x4xf32>
    %47 = arith.subf %45, %46 : vector<64x4xf32>
    %cst_37 = arith.constant 0.000000e+00 : f32
    %48 = vector.broadcast %cst_37 : f32 to vector<64x4xf32>
    %49 = arith.maximumf %47, %48 : vector<64x4xf32>
    %cst_38 = arith.constant 9.99999974E-6 : f32
    %50 = vector.broadcast %cst_38 : f32 to vector<64x4xf32>
    %51 = arith.addf %49, %50 : vector<64x4xf32>
    %52 = math.rsqrt %51 : vector<64x4xf32>
    %cst_39 = arith.constant dense<0.000000e+00> : vector<64x128xf32>
    %53 = tpu.matmul %43, %2, %cst_39 {dimension_numbers = #tpu.dot_dimension_numbers<[1], [0], [0], [1], [0, 0, 1, 1], [], []>} : vector<64x4xf32>, vector<4x128xf32>, vector<64x128xf32> -> vector<64x128xf32>
    %cst_40 = arith.constant dense<0.000000e+00> : vector<64x128xf32>
    %54 = tpu.matmul %52, %2, %cst_40 {dimension_numbers = #tpu.dot_dimension_numbers<[1], [0], [0], [1], [0, 0, 1, 1], [], []>} : vector<64x4xf32>, vector<4x128xf32>, vector<64x128xf32> -> vector<64x128xf32>
    %55 = arith.subf %36, %53 : vector<64x128xf32>
    %56 = arith.mulf %55, %54 : vector<64x128xf32>
    %57 = vector.broadcast %3 : vector<1x128xf32> to vector<64x128xf32>
    %58 = arith.mulf %56, %57 : vector<64x128xf32>
    %59 = vector.broadcast %4 : vector<1x128xf32> to vector<64x128xf32>
    %60 = arith.addf %58, %59 : vector<64x128xf32>
    %61 = vector.shape_cast %60 : vector<64x128xf32> to vector<8x1x8x128xf32>
    %c0_41 = arith.constant 0 : index
    %c1_42 = arith.constant 1 : index
    %c0_43 = arith.constant 0 : index
    %c0_44 = arith.constant 0 : index
    %62 = vector.load %arg8[%c0_41, %c1_42, %c0_43, %c0_44] : memref<8x4x8x128xf32, #tpu.memory_space<vmem>>, vector<8x1x8x128xf32>
    tpu.vector_store %arg8[%c0_41, %c1_42, %c0_43, %c0_44], %61 {strides = array<i32>} : memref<8x4x8x128xf32, #tpu.memory_space<vmem>>, vector<8x1x8x128xf32>,
    %c2 = arith.constant 2 : index
    %c0_45 = arith.constant 0 : index
    %c0_46 = arith.constant 0 : index
    %63 = vector.load %arg2[%c2, %c0_45, %c0_46] : memref<4x32x128xf32, #tpu.memory_space<vmem>>, vector<1x32x128xf32>
    %64 = vector.shape_cast %63 : vector<1x32x128xf32> to vector<32x128xf32>
    %cst_47 = arith.constant dense<0.000000e+00> : vector<64x128xf32>
    %65 = tpu.matmul %0, %64, %cst_47 {dimension_numbers = #tpu.dot_dimension_numbers<[1], [0], [0], [1], [0, 0, 1, 1], [], []>} : vector<64x32xf32>, vector<32x128xf32>, vector<64x128xf32> -> vector<64x128xf32>
    %c2_48 = arith.constant 2 : index
    %c0_49 = arith.constant 0 : index
    %c0_50 = arith.constant 0 : index
    %66 = vector.load %arg3[%c2_48, %c0_49, %c0_50] : memref<4x32x4xf32, #tpu.memory_space<vmem>>, vector<1x32x4xf32>
    %67 = vector.shape_cast %66 : vector<1x32x4xf32> to vector<32x4xf32>
    %cst_51 = arith.constant dense<0.000000e+00> : vector<64x4xf32>
    %68 = tpu.matmul %0, %67, %cst_51 {dimension_numbers = #tpu.dot_dimension_numbers<[1], [0], [0], [1], [0, 0, 1, 1], [], []>} : vector<64x32xf32>, vector<32x4xf32>, vector<64x4xf32> -> vector<64x4xf32>
    %69 = arith.mulf %65, %65 : vector<64x128xf32>
    %cst_52 = arith.constant dense<0.000000e+00> : vector<64x4xf32>
    %70 = tpu.matmul %69, %1, %cst_52 {dimension_numbers = #tpu.dot_dimension_numbers<[1], [0], [0], [1], [0, 0, 1, 1], [], []>} : vector<64x128xf32>, vector<128x4xf32>, vector<64x4xf32> -> vector<64x4xf32>
    %cst_53 = arith.constant 3.125000e-02 : f32
    %71 = vector.broadcast %cst_53 : f32 to vector<64x4xf32>
    %72 = arith.mulf %68, %71 : vector<64x4xf32>
    %cst_54 = arith.constant 3.125000e-02 : f32
    %73 = vector.broadcast %cst_54 : f32 to vector<64x4xf32>
    %74 = arith.mulf %70, %73 : vector<64x4xf32>
    %75 = arith.mulf %72, %72 : vector<64x4xf32>
    %76 = arith.subf %74, %75 : vector<64x4xf32>
    %cst_55 = arith.constant 0.000000e+00 : f32
    %77 = vector.broadcast %cst_55 : f32 to vector<64x4xf32>
    %78 = arith.maximumf %76, %77 : vector<64x4xf32>
    %cst_56 = arith.constant 9.99999974E-6 : f32
    %79 = vector.broadcast %cst_56 : f32 to vector<64x4xf32>
    %80 = arith.addf %78, %79 : vector<64x4xf32>
    %81 = math.rsqrt %80 : vector<64x4xf32>
    %cst_57 = arith.constant dense<0.000000e+00> : vector<64x128xf32>
    %82 = tpu.matmul %72, %2, %cst_57 {dimension_numbers = #tpu.dot_dimension_numbers<[1], [0], [0], [1], [0, 0, 1, 1], [], []>} : vector<64x4xf32>, vector<4x128xf32>, vector<64x128xf32> -> vector<64x128xf32>
    %cst_58 = arith.constant dense<0.000000e+00> : vector<64x128xf32>
    %83 = tpu.matmul %81, %2, %cst_58 {dimension_numbers = #tpu.dot_dimension_numbers<[1], [0], [0], [1], [0, 0, 1, 1], [], []>} : vector<64x4xf32>, vector<4x128xf32>, vector<64x128xf32> -> vector<64x128xf32>
    %84 = arith.subf %65, %82 : vector<64x128xf32>
    %85 = arith.mulf %84, %83 : vector<64x128xf32>
    %86 = vector.broadcast %3 : vector<1x128xf32> to vector<64x128xf32>
    %87 = arith.mulf %85, %86 : vector<64x128xf32>
    %88 = vector.broadcast %4 : vector<1x128xf32> to vector<64x128xf32>
    %89 = arith.addf %87, %88 : vector<64x128xf32>
    %90 = vector.shape_cast %89 : vector<64x128xf32> to vector<8x1x8x128xf32>
    %c0_59 = arith.constant 0 : index
    %c2_60 = arith.constant 2 : index
    %c0_61 = arith.constant 0 : index
    %c0_62 = arith.constant 0 : index
    %91 = vector.load %arg8[%c0_59, %c2_60, %c0_61, %c0_62] : memref<8x4x8x128xf32, #tpu.memory_space<vmem>>, vector<8x1x8x128xf32>
    tpu.vector_store %arg8[%c0_59, %c2_60, %c0_61, %c0_62], %90 {strides = array<i32>} : memref<8x4x8x128xf32, #tpu.memory_space<vmem>>, vector<8x1x8x128xf32>,
    %c3 = arith.constant 3 : index
    %c0_63 = arith.constant 0 : index
    %c0_64 = arith.constant 0 : index
    %92 = vector.load %arg2[%c3, %c0_63, %c0_64] : memref<4x32x128xf32, #tpu.memory_space<vmem>>, vector<1x32x128xf32>
    %93 = vector.shape_cast %92 : vector<1x32x128xf32> to vector<32x128xf32>
    %cst_65 = arith.constant dense<0.000000e+00> : vector<64x128xf32>
    %94 = tpu.matmul %0, %93, %cst_65 {dimension_numbers = #tpu.dot_dimension_numbers<[1], [0], [0], [1], [0, 0, 1, 1], [], []>} : vector<64x32xf32>, vector<32x128xf32>, vector<64x128xf32> -> vector<64x128xf32>
    %c3_66 = arith.constant 3 : index
    %c0_67 = arith.constant 0 : index
    %c0_68 = arith.constant 0 : index
    %95 = vector.load %arg3[%c3_66, %c0_67, %c0_68] : memref<4x32x4xf32, #tpu.memory_space<vmem>>, vector<1x32x4xf32>
    %96 = vector.shape_cast %95 : vector<1x32x4xf32> to vector<32x4xf32>
    %cst_69 = arith.constant dense<0.000000e+00> : vector<64x4xf32>
    %97 = tpu.matmul %0, %96, %cst_69 {dimension_numbers = #tpu.dot_dimension_numbers<[1], [0], [0], [1], [0, 0, 1, 1], [], []>} : vector<64x32xf32>, vector<32x4xf32>, vector<64x4xf32> -> vector<64x4xf32>
    %98 = arith.mulf %94, %94 : vector<64x128xf32>
    %cst_70 = arith.constant dense<0.000000e+00> : vector<64x4xf32>
    %99 = tpu.matmul %98, %1, %cst_70 {dimension_numbers = #tpu.dot_dimension_numbers<[1], [0], [0], [1], [0, 0, 1, 1], [], []>} : vector<64x128xf32>, vector<128x4xf32>, vector<64x4xf32> -> vector<64x4xf32>
    %cst_71 = arith.constant 3.125000e-02 : f32
    %100 = vector.broadcast %cst_71 : f32 to vector<64x4xf32>
    %101 = arith.mulf %97, %100 : vector<64x4xf32>
    %cst_72 = arith.constant 3.125000e-02 : f32
    %102 = vector.broadcast %cst_72 : f32 to vector<64x4xf32>
    %103 = arith.mulf %99, %102 : vector<64x4xf32>
    %104 = arith.mulf %101, %101 : vector<64x4xf32>
    %105 = arith.subf %103, %104 : vector<64x4xf32>
    %cst_73 = arith.constant 0.000000e+00 : f32
    %106 = vector.broadcast %cst_73 : f32 to vector<64x4xf32>
    %107 = arith.maximumf %105, %106 : vector<64x4xf32>
    %cst_74 = arith.constant 9.99999974E-6 : f32
    %108 = vector.broadcast %cst_74 : f32 to vector<64x4xf32>
    %109 = arith.addf %107, %108 : vector<64x4xf32>
    %110 = math.rsqrt %109 : vector<64x4xf32>
    %cst_75 = arith.constant dense<0.000000e+00> : vector<64x128xf32>
    %111 = tpu.matmul %101, %2, %cst_75 {dimension_numbers = #tpu.dot_dimension_numbers<[1], [0], [0], [1], [0, 0, 1, 1], [], []>} : vector<64x4xf32>, vector<4x128xf32>, vector<64x128xf32> -> vector<64x128xf32>
    %cst_76 = arith.constant dense<0.000000e+00> : vector<64x128xf32>
    %112 = tpu.matmul %110, %2, %cst_76 {dimension_numbers = #tpu.dot_dimension_numbers<[1], [0], [0], [1], [0, 0, 1, 1], [], []>} : vector<64x4xf32>, vector<4x128xf32>, vector<64x128xf32> -> vector<64x128xf32>
    %113 = arith.subf %94, %111 : vector<64x128xf32>
    %114 = arith.mulf %113, %112 : vector<64x128xf32>
    %115 = vector.broadcast %3 : vector<1x128xf32> to vector<64x128xf32>
    %116 = arith.mulf %114, %115 : vector<64x128xf32>
    %117 = vector.broadcast %4 : vector<1x128xf32> to vector<64x128xf32>
    %118 = arith.addf %116, %117 : vector<64x128xf32>
    %119 = vector.shape_cast %118 : vector<64x128xf32> to vector<8x1x8x128xf32>
    %c0_77 = arith.constant 0 : index
    %c3_78 = arith.constant 3 : index
    %c0_79 = arith.constant 0 : index
    %c0_80 = arith.constant 0 : index
    %120 = vector.load %arg8[%c0_77, %c3_78, %c0_79, %c0_80] : memref<8x4x8x128xf32, #tpu.memory_space<vmem>>, vector<8x1x8x128xf32>
    tpu.vector_store %arg8[%c0_77, %c3_78, %c0_79, %c0_80], %119 {strides = array<i32>} : memref<8x4x8x128xf32, #tpu.memory_space<vmem>>, vector<8x1x8x128xf32>,
    return
  }
  func.func @transform_0(%arg0: i32) -> (i32, i32) {
    %c0_i32 = arith.constant 0 : i32
    %c0_i32_0 = arith.constant 0 : i32
    return %arg0, %c0_i32 : i32, i32
  }
  func.func @transform_1(%arg0: i32) -> (i32, i32, i32) {
    %c0_i32 = arith.constant 0 : i32
    %c0_i32_0 = arith.constant 0 : i32
    %c0_i32_1 = arith.constant 0 : i32
    %c0_i32_2 = arith.constant 0 : i32
    return %c0_i32, %c0_i32_0, %c0_i32_1 : i32, i32, i32
  }
  func.func @transform_2(%arg0: i32) -> (i32, i32, i32) {
    %c0_i32 = arith.constant 0 : i32
    %c0_i32_0 = arith.constant 0 : i32
    %c0_i32_1 = arith.constant 0 : i32
    %c0_i32_2 = arith.constant 0 : i32
    return %c0_i32, %c0_i32_0, %c0_i32_1 : i32, i32, i32
  }
  func.func @transform_3(%arg0: i32) -> (i32, i32) {
    %c0_i32 = arith.constant 0 : i32
    %c0_i32_0 = arith.constant 0 : i32
    %c0_i32_1 = arith.constant 0 : i32
    return %c0_i32, %c0_i32_0 : i32, i32
  }
  func.func @transform_4(%arg0: i32) -> (i32, i32) {
    %c0_i32 = arith.constant 0 : i32
    %c0_i32_0 = arith.constant 0 : i32
    %c0_i32_1 = arith.constant 0 : i32
    return %c0_i32, %c0_i32_0 : i32, i32
  }
  func.func @transform_5(%arg0: i32) -> (i32, i32) {
    %c0_i32 = arith.constant 0 : i32
    %c0_i32_0 = arith.constant 0 : i32
    %c0_i32_1 = arith.constant 0 : i32
    return %c0_i32, %c0_i32_0 : i32, i32
  }
  func.func @transform_6(%arg0: i32) -> (i32, i32) {
    %c0_i32 = arith.constant 0 : i32
    %c0_i32_0 = arith.constant 0 : i32
    %c0_i32_1 = arith.constant 0 : i32
    return %c0_i32, %c0_i32_0 : i32, i32
  }
  func.func @transform_7(%arg0: i32) -> (i32, i32, i32, i32) {
    %c0_i32 = arith.constant 0 : i32
    %c0_i32_0 = arith.constant 0 : i32
    %c0_i32_1 = arith.constant 0 : i32
    %c0_i32_2 = arith.constant 0 : i32
    return %arg0, %c0_i32, %c0_i32_0, %c0_i32_1 : i32, i32, i32, i32
  }
}

</mosaic_0001>

<bundles_post_ra>
// kernel: tpu_custom_call.1
= control target key start
LH: loop header
LB: loop body
LE: loop exit
PB: predicated region body
PF: predicated region fallthrough
CT: control target
= control target key end

     0   :  { %12 = vsyncpa [#allocation3], 0  ;;  %s3708_s0 = inlined_call_operand.vmem [shape: f32[128,32], index: 0, kind: input, shape index: {}]   ;;  %s3709_s1 = inlined_call_operand.vmem [shape: f32[4,32,128], index: 1, kind: input, shape index: {}]   ;;  %s3710_s2 = inlined_call_operand.vmem [shape: f32[4,32,4], index: 2, kind: input, shape index: {}]   ;;  %s3711_s3 = inlined_call_operand.vmem [shape: f32[128,4], index: 3, kind: input, shape index: {}]   ;;  %s3712_s4 = inlined_call_operand.vmem [shape: f32[4,128], index: 4, kind: input, shape index: {}]   ;;  %s3713_s5 = inlined_call_operand.vmem [shape: f32[1,128], index: 5, kind: input, shape index: {}]   ;;  %s3714_s6 = inlined_call_operand.vmem [shape: f32[1,128], index: 6, kind: input, shape index: {}]   ;;  %s3715_s7 = inlined_call_operand.hbm [shape: f32[16,4,8,128], index: 7, kind: output, shape index: {}]  }
   0x1   :  { %14 = vsyncpa [#allocation3 + $0x1], 0  ;;  %s2633_s24 = smov 0   ;;  %s2635_s25 = smov 0  }
   0x2   :  { %s2637_s26 = smov 0   ;;  %s2639_s27 = smov 0  }
   0x3 LB: > { %s2654_s28 = sadd.s32 4294967295, %s2589_s27   ;;  %s2179_s29 = sadd.s32 4294967294, %s2589_s27   ;;  %s2589_s27 = sphi %s2639_s27, %s3723_s27   ;;  %s2585_s26 = sphi %s2637_s26, %s3722_s26   ;;  %s2581_s25 = sphi %s2635_s25, %s3721_s25   ;;  %s2577_s24 = sphi %s2633_s24, %s3720_s24  }
   0x4   : > { %s2658_s30 = sadd.s32 1, %s2589_s27   ;;  %s179_s8 = sadd.s32 1, %s2585_s26 }
   0x5   : > { %s176_s9 = ssub.s32 %s2589_s27, %s2658_s30  ;;  %p189_p0 = scmp.ne.s32.totalorder %s2585_s26, %s2581_s25 }
   0x6   : > { %p177_p1 = scmp.eq.s32.totalorder %s176_s9, 0  ;;  %p190_p2 = scmp.eq.s32.totalorder %s2654_s28, 1 }
   0x7   : > { %p195_p3 = scmp.ne.s32.totalorder %s2581_s25, %s2577_s24  ;;  %p196_p4 = scmp.eq.s32.totalorder %s2179_s29, 1 }
   0x8   : > { %s2669_s10 = scalar_select %p177_p1, %s2585_s26, %s179_s8  }
   0x9   : > { %p2671_p5 = por %p190_p2, %p189_p0  ;;  %p2675_p6 = por %p196_p4, %p195_p3 }
   0xa   : > { %p2182_p7 = scmp.ge.s32.totalorder %s2589_s27, 1  ;;  %p241_p8 = scmp.lt.s32.totalorder %s2589_s27, 3 }
   0xc   : > { %p242_p9 = pnand %p2182_p7, %p241_p8 }
   0xd   : > { %s2184_s19 = sshll.u32 (!%p242_p9), %s2654_s28, 3  ;;  %s270_s15 = sand.u32 (!%p242_p9), 1, %s2581_s25  }
   0xe   : > { %245 = sbr.rel (%p242_p9) target bundleno = 957 (0x3bd), region = 48  ;;  %p274_p10 = scmp.lt.s32.totalorder (!%p242_p9), %s2184_s19, 15 }
   0xf   : > { %s2183_s18 = sshll.u32 (!%p242_p9), %s270_s15, 8 }
  0x10   : > { %s3339_s22 = scalar_lea.vmem (!%p242_p9), [#allocation2], %s2183_s18 }
  0x11   : > { %s2114_s9 = sshll.u32 (!%p242_p9), %s3339_s22, 4  ;;  %s2115_s9 = int_to_ptr.vmem [resolvable:$true] %s2114_s9 }
  0x13   : > { %v310_v0 = vld [vmem:[%s3709_s1 + $0x18] sm:$0xff]  ;;  %v309_v2 = vld [vmem:[%s3709_s1 + $0x10] sm:$0xff]  ;;  %v308_v4 = vld [vmem:[%s3709_s1 + $0x8] sm:$0xff]  ;;  %s3725_s19 = smov (!%p274_p10, %s2184_s19), 15  ;;  %vm311_vm0 = vcmask 261120   ;;  %vm624_vm1 = vcmask 1043456  }
  0x14   : > { %v380_v1 = vld [vmem:[%s3710_s2 + $0x18] sm:$0xff]  ;;  %348 = vmatpush.msra.mxu0 %v310_v0  ;;  %v379_v3 = vld [vmem:[%s3710_s2 + $0x10] sm:$0xff]  ;;  %v378_v5 = vld [vmem:[%s3710_s2 + $0x8] sm:$0xff]  ;;  %s2185_s16 = sshll.u32 %s3725_s19, 3  ;;  %vm599_vm2 = vcmask 31744   ;;  %s2547_s19 = scalar_lea.hbm %s3715_s7, 512 }
  0x15   : > { %393 = vmatpush.msra.mxu1 %v380_v1  ;;  %v307_v6 = vld [vmem:[%s3709_s1] sm:$0xff]  ;;  %s2709_s20 = scalar_lea.vmem %s3708_s0, %s2185_s16  ;;  %v2223_v12 = vld [vmem:[%s3709_s1 + $0x38] sm:$0xff]  ;;  %v2222_v13 = vld [vmem:[%s3709_s1 + $0x30] sm:$0xff] }
  0x16   : > { %349 = vmatpush.msra.mxu0 %v309_v2  ;;  %v377_v7 = vld [vmem:[%s3710_s2] sm:$0xff]  ;;  %v2719_v9 = vld [vmem:[%s2709_s20 + $0x8] sm:$0xff]  ;;  %v2726_v10 = vld [vmem:[%s2709_s20 + $0x10] sm:$0xff] }
  0x17   : > { %394 = vmatpush.msra.mxu1 %v379_v3  ;;  %v2712_v8 = vld [vmem:[%s2709_s20] sm:$0xff]  ;;  %v2733_v11 = vld [vmem:[%s2709_s20 + $0x18] sm:$0xff]  ;;  %v2221_v14 = vld [vmem:[%s3709_s1 + $0x28] sm:$0xff] }
  0x18   : > { %350 = vmatpush.msra.mxu0 %v308_v4  ;;  %v2220_v15 = vld [vmem:[%s3709_s1 + $0x20] sm:$0xff]  ;;  %v2759_v17 = vld [vmem:[%s2709_s20 + $0x28] sm:$0xff]  ;;  %v2766_v18 = vld [vmem:[%s2709_s20 + $0x30] sm:$0xff] }
  0x19   : > { %395 = vmatpush.msra.mxu1 %v378_v5  ;;  %v2752_v16 = vld [vmem:[%s2709_s20 + $0x20] sm:$0xff]  ;;  %v2775_v19 = vld [vmem:[%s3711_s3 + $0x78] sm:$0xff]  ;;  %v2780_v20 = vld [vmem:[%s3711_s3 + $0x70] sm:$0xff] }
  0x1a   : > { %351 = vmatpush.msra.mxu0 %v307_v6  ;;  %430 = vmatpush.msra.mxu2 %v2775_v19  ;;  %v2787_v21 = vld [vmem:[%s3711_s3 + $0x68] sm:$0xff]  ;;  %v2794_v22 = vld [vmem:[%s3711_s3 + $0x60] sm:$0xff]  ;;  %v2797_v23 = vld [vmem:[%s2709_s20 + $0x38] sm:$0xff] }
  0x1b   : > { %396 = vmatpush.msra.mxu1 %v377_v7  ;;  %2186 = vmatmul.msk.f32.vlgmr.msra.gmra.mxu0 %vm311_vm0, %v2712_v8  ;;  %v2810_v24 = vld [vmem:[%s3711_s3 + $0x58] sm:$0xff]  ;;  %v2815_v25 = vld [vmem:[%s3711_s3 + $0x50] sm:$0xff]  ;;  %v2822_v26 = vld [vmem:[%s3711_s3 + $0x48] sm:$0xff] }
  0x1c   : > { %2194 = vmatmul.msk.f32.vlgmr.msra.gmra.mxu1 %vm311_vm0, %v2712_v8  ;;  %797 = vmatpush.msrb.mxu0 %v2223_v12  ;;  %v2829_v27 = vld [vmem:[%s3711_s3 + $0x40] sm:$0xff]  ;;  %v2840_v28 = vld [vmem:[%s3711_s3 + $0x38] sm:$0xff]  ;;  %v2845_v29 = vld [vmem:[%s3711_s3 + $0x30] sm:$0xff] }
  0x1d   : > { %431 = vmatpush.msra.mxu2 %v2780_v20  ;;  %v2852_v30 = vld [vmem:[%s3711_s3 + $0x28] sm:$0xff]  ;;  %v2859_v31 = vld [vmem:[%s3711_s3 + $0x20] sm:$0xff]  ;;  %v2870_v32 = vld [vmem:[%s3711_s3 + $0x18] sm:$0xff] }
  0x1e   : > { %798 = vmatpush.msrb.mxu0 %v2222_v13  ;;  %v2875_v33 = vld [vmem:[%s3711_s3 + $0x10] sm:$0xff]  ;;  %v2888_v34 = vld [vmem:[%s3711_s3 + $0x8] sm:$0xff]  ;;  %v2895_v35 = vld [vmem:[%s3711_s3] sm:$0xff] }
  0x1f   : > { %432 = vmatpush.msra.mxu2 %v2787_v21  ;;  %v2900_v36 = vld [vmem:[%s3712_s4] sm:$0xf]  ;;  %v2235_v57 = vld [vmem:[%s3710_s2 + $0x38] sm:$0xff]  ;;  %v2234_v58 = vld [vmem:[%s3710_s2 + $0x30] sm:$0xff] }
  0x20   : > { %799 = vmatpush.msrb.mxu0 %v2221_v14  ;;  %2202 = vmatpush.msk.msra.mxu3 %vm624_vm1, %v2900_v36  ;;  %v2233_v59 = vld [vmem:[%s3710_s2 + $0x28] sm:$0xff]  ;;  %v2232_v60 = vld [vmem:[%s3710_s2 + $0x20] sm:$0xff] }
  0x21   : > { %433 = vmatpush.msra.mxu2 %v2794_v22  ;;  %843 = vmatpush.msrb.mxu1 %v2235_v57 }
  0x22   : > { %800 = vmatpush.msrb.mxu0 %v2220_v15  ;;  %2211 = vmatpush.msk.msrb.mxu3 %vm624_vm1, %v2900_v36 }
  0x23   : > { %2187 = vmatmul.msk.f32.gmra.mxu0 %vm311_vm0, %v2719_v9  ;;  %434 = vmatpush.msra.mxu2 %v2810_v24 }
  0x24   : > { %2195 = vmatmul.msk.f32.gmra.mxu1 %vm311_vm0, %v2719_v9  ;;  %880 = vmatpush.msra.mxu0 %v2775_v19 }
  0x25   : > { %435 = vmatpush.msra.mxu2 %v2815_v25  ;;  %844 = vmatpush.msrb.mxu1 %v2234_v58  ;;  %v2273_v58 = vld [vmem:[%s3709_s1 + $0x58] sm:$0xff] }
  0x26   : > { %881 = vmatpush.msra.mxu0 %v2780_v20 }
  0x27   : > { %436 = vmatpush.msra.mxu2 %v2822_v26  ;;  %845 = vmatpush.msrb.mxu1 %v2233_v59  ;;  %v2272_v59 = vld [vmem:[%s3709_s1 + $0x50] sm:$0xff] }
  0x28   : > { %882 = vmatpush.msra.mxu0 %v2787_v21 }
  0x29   : > { %437 = vmatpush.msra.mxu2 %v2829_v27  ;;  %846 = vmatpush.msrb.mxu1 %v2232_v60  ;;  %v2271_v60 = vld [vmem:[%s3709_s1 + $0x48] sm:$0xff] }
  0x2a   : > { %883 = vmatpush.msra.mxu0 %v2794_v22 }
  0x2b   : > { %2188 = vmatmul.msk.f32.gmra.mxu0 %vm311_vm0, %v2726_v10  ;;  %438 = vmatpush.msra.mxu2 %v2840_v28 }
  0x2c   : > { %2196 = vmatmul.msk.f32.gmra.mxu1 %vm311_vm0, %v2726_v10  ;;  %884 = vmatpush.msra.mxu0 %v2810_v24 }
  0x2d   : > { %439 = vmatpush.msra.mxu2 %v2845_v29  ;;  %1237 = vmatpush.msra.mxu1 %v2273_v58 }
  0x2e   : > { %885 = vmatpush.msra.mxu0 %v2815_v25 }
  0x2f   : > { %440 = vmatpush.msra.mxu2 %v2852_v30  ;;  %1238 = vmatpush.msra.mxu1 %v2272_v59 }
  0x30   : > { %886 = vmatpush.msra.mxu0 %v2822_v26 }
  0x31   : > { %441 = vmatpush.msra.mxu2 %v2859_v31  ;;  %1239 = vmatpush.msra.mxu1 %v2271_v60 }
  0x32   : > { %887 = vmatpush.msra.mxu0 %v2829_v27 }
  0x33   : > { %2189 = vmatmul.msk.f32.gmra.mxu0 %vm311_vm0, %v2733_v11  ;;  %442 = vmatpush.msra.mxu2 %v2870_v32 }
  0x34   : > { %2197 = vmatmul.msk.f32.gmra.mxu1 %vm311_vm0, %v2733_v11  ;;  %888 = vmatpush.msra.mxu0 %v2840_v28 }
  0x35   : > { %443 = vmatpush.msra.mxu2 %v2875_v33 }
  0x36   : > { %889 = vmatpush.msra.mxu0 %v2845_v29 }
  0x37   : > { %444 = vmatpush.msra.mxu2 %v2888_v34 }
  0x38   : > { %890 = vmatpush.msra.mxu0 %v2852_v30 }
  0x39   : > { %445 = vmatpush.msra.mxu2 %v2895_v35 }
  0x3a   : > { %891 = vmatpush.msra.mxu0 %v2859_v31 }
  0x3b   : > { %2190 = vmatmul.msk.f32.gmra.mxu0 %vm311_vm0, %v2752_v16  ;;  %2378 = vmatpush.msrb.mxu2 %v2775_v19 }
  0x3c   : > { %2198 = vmatmul.msk.f32.gmra.mxu1 %vm311_vm0, %v2752_v16  ;;  %892 = vmatpush.msra.mxu0 %v2870_v32 }
  0x3d   : > { %2380 = vmatpush.msrb.mxu2 %v2780_v20 }
  0x3e   : > { %893 = vmatpush.msra.mxu0 %v2875_v33 }
  0x3f   : > { %2382 = vmatpush.msrb.mxu2 %v2787_v21 }
  0x40   : > { %894 = vmatpush.msra.mxu0 %v2888_v34 }
  0x41   : > { %2384 = vmatpush.msrb.mxu2 %v2794_v22 }
  0x42   : > { %895 = vmatpush.msra.mxu0 %v2895_v35 }
  0x43   : > { %2191 = vmatmul.msk.f32.gmra.mxu0 %vm311_vm0, %v2759_v17  ;;  %2386 = vmatpush.msrb.mxu2 %v2810_v24 }
  0x44   : > { %2199 = vmatmul.msk.f32.gmra.mxu1 %vm311_vm0, %v2759_v17 }
  0x45   : > { %2388 = vmatpush.msrb.mxu2 %v2815_v25 }
  0x47   : > { %2390 = vmatpush.msrb.mxu2 %v2822_v26 }
  0x49   : > { %2392 = vmatpush.msrb.mxu2 %v2829_v27 }
  0x4b   : > { %2192 = vmatmul.msk.f32.gmra.mxu0 %vm311_vm0, %v2766_v18  ;;  %2394 = vmatpush.msrb.mxu2 %v2840_v28 }
  0x4c   : > { %2200 = vmatmul.msk.f32.gmra.mxu1 %vm311_vm0, %v2766_v18 }
  0x4d   : > { %2396 = vmatpush.msrb.mxu2 %v2845_v29 }
  0x4f   : > { %2398 = vmatpush.msrb.mxu2 %v2852_v30 }
  0x51   : > { %2400 = vmatpush.msrb.mxu2 %v2859_v31 }
  0x53   : > { %2193 = vmatmul.msk.f32.gmra.mxu0 %vm311_vm0, %v2797_v23  ;;  %2402 = vmatpush.msrb.mxu2 %v2870_v32 }
  0x54   : > { %2201 = vmatmul.msk.f32.gmra.mxu1 %vm311_vm0, %v2797_v23 }
  0x55   : > { %2404 = vmatpush.msrb.mxu2 %v2875_v33 }
  0x57   : > { %2406 = vmatpush.msrb.mxu2 %v2888_v34 }
  0x59   : > { %2408 = vmatpush.msrb.mxu2 %v2895_v35 }
  0x5b   : > { %2224 = vmatmul.msk.f32.vlgmr.msrb.gmra.mxu0 %vm311_vm0, %v2712_v8 }
  0x5c   : > { %2253 = vmatpush.msk.msrb.mxu0 %vm624_vm1, %v2900_v36  ;;  %2236 = vmatmul.msk.f32.vlgmr.msrb.gmra.mxu1 %vm311_vm0, %v2712_v8 }
  0x63   : > { %2225 = vmatmul.msk.f32.gmra.mxu0 %vm311_vm0, %v2719_v9 }
  0x64   : > { %2237 = vmatmul.msk.f32.gmra.mxu1 %vm311_vm0, %v2719_v9 }
  0x6b   : > { %2226 = vmatmul.msk.f32.gmra.mxu0 %vm311_vm0, %v2726_v10 }
  0x6c   : > { %2238 = vmatmul.msk.f32.gmra.mxu1 %vm311_vm0, %v2726_v10 }
  0x73   : > { %2227 = vmatmul.msk.f32.gmra.mxu0 %vm311_vm0, %v2733_v11 }
  0x74   : > { %2239 = vmatmul.msk.f32.gmra.mxu1 %vm311_vm0, %v2733_v11 }
  0x7b   : > { %2228 = vmatmul.msk.f32.gmra.mxu0 %vm311_vm0, %v2752_v16 }
  0x7c   : > { %2240 = vmatmul.msk.f32.gmra.mxu1 %vm311_vm0, %v2752_v16 }
  0x83   : > { %2229 = vmatmul.msk.f32.gmra.mxu0 %vm311_vm0, %v2759_v17 }
  0x84   : > { %2241 = vmatmul.msk.f32.gmra.mxu1 %vm311_vm0, %v2759_v17 }
  0x8b   : > { %2230 = vmatmul.msk.f32.gmra.mxu0 %vm311_vm0, %v2766_v18 }
  0x8c   : > { %2242 = vmatmul.msk.f32.gmra.mxu1 %vm311_vm0, %v2766_v18 }
  0x93   : > { %2231 = vmatmul.msk.f32.gmra.mxu0 %vm311_vm0, %v2797_v23 }
  0x94   : > { %2243 = vmatmul.msk.f32.gmra.mxu1 %vm311_vm0, %v2797_v23 }
  0x98   : > { %v2933_v37 = vpop.f32.mrf.mxu0 }
  0x99   : > { %v398_v38 = vpop.f32.mrf.mxu1  ;;  %v422_v40 = vmul.f32 %v2933_v37, %v2933_v37 }
  0x9a   : > { %v2935_v39 = vmul.f32 0.03125, %v398_v38 }
  0x9b   : > { %446 = vmatmul.f32.vlgmr.msra.gmra.mxu2 %v422_v40 }
  0x9c   : > { %2203 = vmatmul.msk.f32.vlgmr.msra.gmra.mxu3 %vm599_vm2, %v2935_v39 }
  0x9d   : > { %2379 = vmatpush.msra.mxu3 %v2775_v19 }
  0x9f   : > { %2381 = vmatpush.msra.mxu3 %v2780_v20 }
  0xa0   : > { %v2944_v41 = vpop.f32.mrf.mxu0 }
  0xa1   : > { %v401_v42 = vpop.f32.mrf.mxu1  ;;  %2383 = vmatpush.msra.mxu3 %v2787_v21  ;;  %v423_v44 = vmul.f32 %v2944_v41, %v2944_v41 }
  0xa2   : > { %v2947_v43 = vmul.f32 0.03125, %v401_v42 }
  0xa3   : > { %2385 = vmatpush.msra.mxu3 %v2794_v22  ;;  %449 = vmatmul.f32.gmra.mxu2 %v423_v44 }
  0xa4   : > { %2204 = vmatmul.msk.f32.gmra.mxu3 %vm599_vm2, %v2947_v43 }
  0xa5   : > { %2387 = vmatpush.msra.mxu3 %v2810_v24 }
  0xa7   : > { %2389 = vmatpush.msra.mxu3 %v2815_v25 }
  0xa8   : > { %v2956_v45 = vpop.f32.mrf.mxu0 }
  0xa9   : > { %v404_v46 = vpop.f32.mrf.mxu1  ;;  %2391 = vmatpush.msra.mxu3 %v2822_v26  ;;  %v424_v48 = vmul.f32 %v2956_v45, %v2956_v45 }
  0xaa   : > { %v2959_v47 = vmul.f32 0.03125, %v404_v46 }
  0xab   : > { %2393 = vmatpush.msra.mxu3 %v2829_v27  ;;  %452 = vmatmul.f32.gmra.mxu2 %v424_v48 }
  0xac   : > { %2205 = vmatmul.msk.f32.gmra.mxu3 %vm599_vm2, %v2959_v47  ;;  %v489_v60 = vmul.f32 %v2959_v47, %v2959_v47 }
  0xad   : > { %2395 = vmatpush.msra.mxu3 %v2840_v28 }
  0xaf   : > { %2397 = vmatpush.msra.mxu3 %v2845_v29 }
  0xb0   : > { %v2968_v49 = vpop.f32.mrf.mxu0 }
  0xb1   : > { %v407_v50 = vpop.f32.mrf.mxu1  ;;  %2399 = vmatpush.msra.mxu3 %v2852_v30  ;;  %v425_v52 = vmul.f32 %v2968_v49, %v2968_v49 }
  0xb2   : > { %v2971_v51 = vmul.f32 0.03125, %v407_v50 }
  0xb3   : > { %2401 = vmatpush.msra.mxu3 %v2859_v31  ;;  %455 = vmatmul.f32.gmra.mxu2 %v425_v52 }
  0xb4   : > { %2206 = vmatmul.msk.f32.gmra.mxu3 %vm599_vm2, %v2971_v51  ;;  %v490_v47 = vmul.f32 %v2971_v51, %v2971_v51 }
  0xb5   : > { %2403 = vmatpush.msra.mxu3 %v2870_v32 }
  0xb7   : > { %2405 = vmatpush.msra.mxu3 %v2875_v33 }
  0xb8   : > { %v2980_v53 = vpop.f32.mrf.mxu0 }
  0xb9   : > { %v410_v54 = vpop.f32.mrf.mxu1  ;;  %2407 = vmatpush.msra.mxu3 %v2888_v34  ;;  %v426_v56 = vmul.f32 %v2980_v53, %v2980_v53 }
  0xba   : > { %v2983_v55 = vmul.f32 0.03125, %v410_v54 }
  0xbb   : > { %2409 = vmatpush.msra.mxu3 %v2895_v35  ;;  %458 = vmatmul.f32.gmra.mxu2 %v426_v56 }
  0xbc   : > { %2207 = vmatmul.msk.f32.gmra.mxu3 %vm599_vm2, %v2983_v55 }
  0xc0   : > { %v3002_v61 = vpop.f32.mrf.mxu0 }
  0xc1   : > { %v413_v62 = vpop.f32.mrf.mxu1  ;;  %v427_v0 = vmul.f32 %v3002_v61, %v3002_v61 }
  0xc2   : > { %v3004_v63 = vmul.f32 0.03125, %v413_v62 }
  0xc3   : > { %461 = vmatmul.f32.gmra.mxu2 %v427_v0  ;;  %v487_v0 = vmul.f32 %v2935_v39, %v2935_v39  ;;  %v488_v39 = vmul.f32 %v2947_v43, %v2947_v43 }
  0xc4   : > { %2208 = vmatmul.msk.f32.gmra.mxu3 %vm599_vm2, %v3004_v63 }
  0xc8   : > { %v3012_v1 = vpop.f32.mrf.mxu0 }
  0xc9   : > { %v416_v2 = vpop.f32.mrf.mxu1  ;;  %v428_v4 = vmul.f32 %v3012_v1, %v3012_v1 }
  0xca   : > { %v3014_v3 = vmul.f32 0.03125, %v416_v2 }
  0xcb   : > { %464 = vmatmul.f32.gmra.mxu2 %v428_v4  ;;  %v2270_v4 = vld [vmem:[%s3709_s1 + $0x40] sm:$0xff] }
  0xcc   : > { %2209 = vmatmul.msk.f32.gmra.mxu3 %vm599_vm2, %v3014_v3  ;;  %1240 = vmatpush.msra.mxu1 %v2270_v4 }
  0xcd   : > { %2274 = vmatmul.msk.f32.vlgmr.msra.gmra.mxu1 %vm311_vm0, %v2712_v8 }
  0xce   : > { %2303 = vmatpush.msk.msrb.mxu1 %vm624_vm1, %v2900_v36 }
  0xd0   : > { %v3022_v5 = vpop.f32.mrf.mxu0  ;;  %2344 = vmatpush.msk.msra.mxu1 %vm624_vm1, %v2900_v36 }
  0xd1   : > { %v419_v6 = vpop.f32.mrf.mxu1  ;;  %v429_v12 = vmul.f32 %v3022_v5, %v3022_v5 }
  0xd2   : > { %v3024_v7 = vmul.f32 0.03125, %v419_v6 }
  0xd3   : > { %467 = vmatmul.f32.gmra.mxu2 %v429_v12 }
  0xd4   : > { %2210 = vmatmul.msk.f32.gmra.mxu3 %vm599_vm2, %v3024_v7 }
  0xd5   : > { %2275 = vmatmul.msk.f32.gmra.mxu1 %vm311_vm0, %v2719_v9 }
  0xd8   : > { %v3032_v13 = vpop.f32.mrf.mxu0 }
  0xd9   : > { %v872_v14 = vmul.f32 %v3032_v13, %v3032_v13 }
  0xdb   : > { %896 = vmatmul.f32.vlgmr.msra.gmra.mxu0 %v872_v14 }
  0xdc   : > { %2294 = vmatpush.msk.msra.mxu0 %vm624_vm1, %v2900_v36 }
  0xdd   : > { %2276 = vmatmul.msk.f32.gmra.mxu1 %vm311_vm0, %v2726_v10 }
  0xe0   : > { %v3040_v15 = vpop.f32.mrf.mxu0 }
  0xe1   : > { %v873_v38 = vmul.f32 %v3040_v15, %v3040_v15 }
  0xe3   : > { %899 = vmatmul.f32.vlgmr.msrb.gmra.mxu2 %v873_v38 }
  0xe5   : > { %2277 = vmatmul.msk.f32.gmra.mxu1 %vm311_vm0, %v2733_v11 }
  0xe8   : > { %v3046_v40 = vpop.f32.mrf.mxu0 }
  0xe9   : > { %v874_v42 = vmul.f32 %v3046_v40, %v3046_v40 }
  0xeb   : > { %902 = vmatmul.f32.gmra.mxu2 %v874_v42 }
  0xed   : > { %2278 = vmatmul.msk.f32.gmra.mxu1 %vm311_vm0, %v2752_v16 }
  0xf0   : > { %v3052_v44 = vpop.f32.mrf.mxu0 }
  0xf1   : > { %v875_v46 = vmul.f32 %v3052_v44, %v3052_v44 }
  0xf3   : > { %905 = vmatmul.f32.gmra.mxu2 %v875_v46 }
  0xf5   : > { %2279 = vmatmul.msk.f32.gmra.mxu1 %vm311_vm0, %v2759_v17  ;;  %v493_v17 = vmul.f32 %v3014_v3, %v3014_v3 }
  0xf8   : > { %v3058_v48 = vpop.f32.mrf.mxu0 }
  0xf9   : > { %v876_v50 = vmul.f32 %v3058_v48, %v3058_v48 }
  0xfb   : > { %908 = vmatmul.f32.gmra.mxu2 %v876_v50 }
  0xfd   : > { %2280 = vmatmul.msk.f32.gmra.mxu1 %vm311_vm0, %v2766_v18  ;;  %v494_v18 = vmul.f32 %v3024_v7, %v3024_v7 }
 0x100   : > { %v3064_v52 = vpop.f32.mrf.mxu0 }
 0x101   : > { %v877_v54 = vmul.f32 %v3064_v52, %v3064_v52 }
 0x103   : > { %911 = vmatmul.f32.gmra.mxu2 %v877_v54 }
 0x105   : > { %2281 = vmatmul.msk.f32.gmra.mxu1 %vm311_vm0, %v2797_v23 }
 0x108   : > { %v3068_v56 = vpop.f32.mrf.mxu0 }
 0x109   : > { %v878_v57 = vmul.f32 %v3068_v56, %v3068_v56 }
 0x10b   : > { %914 = vmatmul.f32.gmra.mxu2 %v878_v57 }
 0x11e   : > { %v447_v62 = vpop.f32.mrf.mxu2 }
 0x11f   : > { %v479_v2 = vmul.f32 0.03125, %v447_v62 }
 0x121   : > { %v495_v6 = vsub.f32 %v479_v2, %v487_v0 }
 0x123   : > { %v503_v12 = vmax.f32 %v495_v6, 0.0 }
 0x125   : > { %v511_v14 = vadd.f32 1e-05, %v503_v12 }
 0x126   : > { %v450_v38 = vpop.f32.mrf.mxu2 }
 0x127   : > { %2453 = vrsqrt.f32 %v511_v14  ;;  %v480_v42 = vmul.f32 0.03125, %v450_v38  ;;  %vm525_vm4 = vweird.f32 %v511_v14 }
 0x129   : > { %v496_v46 = vsub.f32 %v480_v42, %v488_v39 }
 0x12b   : > { %v504_v50 = vmax.f32 %v496_v46, 0.0 }
 0x12d   : > { %v2454_v54 = vpop.eup %2453  ;;  %v512_v57 = vadd.f32 1e-05, %v504_v50 }
 0x12e   : > { %v520_v58 = vmul.f32 %v2454_v54, %v511_v14  ;;  %v453_v59 = vpop.f32.mrf.mxu2  ;;  %vm526_vm3 = vweird.f32 %v2454_v54 }
 0x12f   : > { %2455 = vrsqrt.f32 %v512_v57  ;;  %v481_v62 = vmul.f32 0.03125, %v453_v59  ;;  %vm527_vm5 = vmor %vm525_vm4, %vm526_vm3  ;;  %vm535_vm7 = vweird.f32 %v512_v57 }
 0x130   : > { %v521_v0 = vmul.f32 %v2454_v54, %v520_v58 }
 0x131   : > { %v497_v2 = vsub.f32 %v481_v62, %v489_v60 }
 0x132   : > { %v522_v43 = vmul.f32 0.5, %v521_v0 }
 0x133   : > { %v505_v4 = vmax.f32 %v497_v2, 0.0 }
 0x134   : > { %v523_v6 = vsub.f32 1.5, %v522_v43 }
 0x135   : > { %v2456_v12 = vpop.eup %2455  ;;  %v513_v38 = vadd.f32 1e-05, %v505_v4 }
 0x136   : > { %v530_v39 = vmul.f32 %v2456_v12, %v512_v57  ;;  %v456_v42 = vpop.f32.mrf.mxu2  ;;  %v524_v46 = vmul.f32 %v2454_v54, %v523_v6  ;;  %vm536_vm6 = vweird.f32 %v2456_v12 }
 0x137   : > { %2457 = vrsqrt.f32 %v513_v38  ;;  %v482_v50 = vmul.f32 0.03125, %v456_v42  ;;  %vm537_vm8 = vmor %vm535_vm7, %vm536_vm6  ;;  %vm545_vm10 = vweird.f32 %v513_v38 }
 0x138   : > { %v528_v58 = vsel %vm527_vm5, %v2454_v54, %v524_v46  ;;  %v531_v59 = vmul.f32 %v2456_v12, %v530_v39  ;;  %v491_v54 = vmul.f32 %v2983_v55, %v2983_v55 }
 0x139   : > { %v498_v60 = vsub.f32 %v482_v50, %v490_v47  ;;  %2212 = vmatmul.msk.f32.vlgmr.msrb.gmra.mxu3 %vm599_vm2, %v528_v58 }
 0x13a   : > { %v532_v62 = vmul.f32 0.5, %v531_v59  ;;  %2244 = vmatpush.msk.msrb.mxu3 %vm624_vm1, %v2900_v36 }
 0x13b   : > { %v506_v0 = vmax.f32 %v498_v60, 0.0 }
 0x13c   : > { %v533_v14 = vsub.f32 1.5, %v532_v62 }
 0x13d   : > { %v2458_v2 = vpop.eup %2457  ;;  %v514_v51 = vadd.f32 1e-05, %v506_v0 }
 0x13e   : > { %v540_v43 = vmul.f32 %v2458_v2, %v513_v38  ;;  %v459_v4 = vpop.f32.mrf.mxu2  ;;  %v534_v6 = vmul.f32 %v2456_v12, %v533_v14  ;;  %vm546_vm9 = vweird.f32 %v2458_v2  ;;  %v848_v38 = vpop.f32.mrf.mxu1 }
 0x13f   : > { %2459 = vrsqrt.f32 %v514_v51  ;;  %v483_v39 = vmul.f32 0.03125, %v459_v4  ;;  %vm547_vm11 = vmor %vm545_vm10, %vm546_vm9  ;;  %vm555_vm13 = vweird.f32 %v514_v51 }
 0x140   : > { %v538_v42 = vsel %vm537_vm8, %v2456_v12, %v534_v6  ;;  %v541_v46 = vmul.f32 %v2458_v2, %v540_v43  ;;  %v492_v12 = vmul.f32 %v3004_v63, %v3004_v63 }
 0x141   : > { %v499_v47 = vsub.f32 %v483_v39, %v491_v54  ;;  %2213 = vmatmul.msk.f32.gmra.mxu3 %vm599_vm2, %v538_v42  ;;  %v2285_v54 = vld [vmem:[%s3710_s2 + $0x58] sm:$0xff] }
 0x142   : > { %v542_v50 = vmul.f32 0.5, %v541_v46  ;;  %1283 = vmatpush.msra.mxu2 %v2285_v54 }
 0x143   : > { %v507_v58 = vmax.f32 %v499_v47, 0.0 }
 0x144   : > { %v543_v59 = vsub.f32 1.5, %v542_v50 }
 0x145   : > { %v2460_v60 = vpop.eup %2459  ;;  %v515_v57 = vadd.f32 1e-05, %v507_v58 }
 0x146   : > { %v550_v62 = vmul.f32 %v2460_v60, %v514_v51  ;;  %v462_v0 = vpop.f32.mrf.mxu2  ;;  %v544_v55 = vmul.f32 %v2458_v2, %v543_v59  ;;  %vm556_vm12 = vweird.f32 %v2460_v60  ;;  %v3120_v59 = vpop.f32.mrf.mxu0  ;;  %v2284_v51 = vld [vmem:[%s3710_s2 + $0x50] sm:$0xff] }
 0x147   : > { %2461 = vrsqrt.f32 %v515_v57  ;;  %v484_v14 = vmul.f32 0.03125, %v462_v0  ;;  %vm557_vm14 = vmor %vm555_vm13, %vm556_vm12  ;;  %1284 = vmatpush.msra.mxu2 %v2284_v51  ;;  %vm565_vm3 = vweird.f32 %v515_v57 }
 0x148   : > { %v548_v43 = vsel %vm547_vm11, %v2458_v2, %v544_v55  ;;  %v551_v4 = vmul.f32 %v2460_v60, %v550_v62 }
 0x149   : > { %v500_v6 = vsub.f32 %v484_v14, %v492_v12  ;;  %2214 = vmatmul.msk.f32.gmra.mxu3 %vm599_vm2, %v548_v43 }
 0x14a   : > { %v552_v39 = vmul.f32 0.5, %v551_v4  ;;  %v3130_v4 = vmul.f32 0.03125, %v848_v38 }
 0x14b   : > { %v508_v42 = vmax.f32 %v500_v6, 0.0  ;;  %v851_v6 = vpop.f32.mrf.mxu1 }
 0x14c   : > { %v553_v63 = vsub.f32 1.5, %v552_v39  ;;  %v3140_v23 = vmul.f32 0.03125, %v851_v6 }
 0x14d   : > { %v2462_v46 = vpop.eup %2461  ;;  %v516_v47 = vadd.f32 1e-05, %v508_v42 }
 0x14e   : > { %v560_v2 = vmul.f32 %v2462_v46, %v515_v57  ;;  %v465_v50 = vpop.f32.mrf.mxu2  ;;  %v554_v58 = vmul.f32 %v2460_v60, %v553_v63  ;;  %vm566_vm15 = vweird.f32 %v2462_v46 }
 0x14f   : > { %2463 = vrsqrt.f32 %v516_v47  ;;  %v485_v62 = vmul.f32 0.03125, %v465_v50  ;;  %vm567_vm4 = vmor %vm565_vm3, %vm566_vm15  ;;  %v937_v50 = vmul.f32 %v3130_v4, %v3130_v4  ;;  %vm575_vm6 = vweird.f32 %v516_v47 }
 0x150   : > { %v558_v0 = vsel %vm557_vm14, %v2460_v60, %v554_v58  ;;  %v561_v55 = vmul.f32 %v2462_v46, %v560_v2 }
 0x151   : > { %v501_v12 = vsub.f32 %v485_v62, %v493_v17  ;;  %2215 = vmatmul.msk.f32.gmra.mxu3 %vm599_vm2, %v558_v0 }
 0x152   : > { %v562_v14 = vmul.f32 0.5, %v561_v55 }
 0x153   : > { %v509_v43 = vmax.f32 %v501_v12, 0.0 }
 0x154   : > { %v563_v3 = vsub.f32 1.5, %v562_v14 }
 0x155   : > { %v2464_v60 = vpop.eup %2463  ;;  %v517_v54 = vadd.f32 1e-05, %v509_v43 }
 0x156   : > { %v570_v39 = vmul.f32 %v2464_v60, %v516_v47  ;;  %v468_v42 = vpop.f32.mrf.mxu2  ;;  %v564_v63 = vmul.f32 %v2462_v46, %v563_v3  ;;  %vm576_vm5 = vweird.f32 %v2464_v60 }
 0x157   : > { %2465 = vrsqrt.f32 %v517_v54  ;;  %v486_v2 = vmul.f32 0.03125, %v468_v42  ;;  %vm577_vm7 = vmor %vm575_vm6, %vm576_vm5  ;;  %vm585_vm9 = vweird.f32 %v517_v54 }
 0x158   : > { %v568_v38 = vsel %vm567_vm4, %v2462_v46, %v564_v63  ;;  %v571_v58 = vmul.f32 %v2464_v60, %v570_v39  ;;  %v897_v17 = vpop.f32.mrf.mxu0  ;;  %v854_v46 = vpop.f32.mrf.mxu1 }
 0x159   : > { %v502_v62 = vsub.f32 %v486_v2, %v494_v18  ;;  %2216 = vmatmul.msk.f32.gmra.mxu3 %vm599_vm2, %v568_v38  ;;  %v929_v0 = vmul.f32 0.03125, %v897_v17  ;;  %v2283_v2 = vld [vmem:[%s3710_s2 + $0x48] sm:$0xff] }
 0x15a   : > { %v572_v57 = vmul.f32 0.5, %v571_v58  ;;  %1285 = vmatpush.msra.mxu2 %v2283_v2  ;;  %v938_v58 = vmul.f32 %v3140_v23, %v3140_v23 }
 0x15b   : > { %v510_v55 = vmax.f32 %v502_v62, 0.0  ;;  %v945_v12 = vsub.f32 %v929_v0, %v937_v50 }
 0x15c   : > { %v573_v7 = vsub.f32 1.5, %v572_v57 }
 0x15d   : > { %v2466_v51 = vpop.eup %2465  ;;  %v518_v14 = vadd.f32 1e-05, %v510_v55  ;;  %v953_v43 = vmax.f32 %v945_v12, 0.0 }
 0x15e   : > { %v580_v3 = vmul.f32 %v2466_v51, %v517_v54  ;;  %v574_v42 = vmul.f32 %v2464_v60, %v573_v7  ;;  %vm586_vm8 = vweird.f32 %v2466_v51 }
 0x15f   : > { %2467 = vrsqrt.f32 %v518_v14  ;;  %v961_v39 = vadd.f32 1e-05, %v953_v43  ;;  %vm587_vm10 = vmor %vm585_vm9, %vm586_vm8  ;;  %vm595_vm14 = vweird.f32 %v518_v14 }
 0x160   : > { %v578_v63 = vsel %vm577_vm7, %v2464_v60, %v574_v42  ;;  %v581_v18 = vmul.f32 %v2466_v51, %v580_v3  ;;  %v857_v7 = vpop.f32.mrf.mxu1  ;;  %v3148_v3 = vmul.f32 0.03125, %v854_v46  ;;  %v2282_v42 = vld [vmem:[%s3710_s2 + $0x40] sm:$0xff] }
 0x161   : > { %2217 = vmatmul.msk.f32.gmra.mxu3 %vm599_vm2, %v578_v63  ;;  %2469 = vrsqrt.f32 %v961_v39  ;;  %1286 = vmatpush.msra.mxu2 %v2282_v42  ;;  %vm975_vm12 = vweird.f32 %v961_v39 }
 0x162   : > { %v582_v50 = vmul.f32 0.5, %v581_v18  ;;  %2286 = vmatmul.msk.f32.vlgmr.msra.gmra.mxu2 %vm311_vm0, %v2712_v8  ;;  %v939_v46 = vmul.f32 %v3148_v3, %v3148_v3 }
 0x164   : > { %v583_v38 = vsub.f32 1.5, %v582_v50 }
 0x165   : > { %v2468_v47 = vpop.eup %2467 }
 0x166   : > { %v590_v17 = vmul.f32 %v2468_v47, %v518_v14  ;;  %v584_v60 = vmul.f32 %v2466_v51, %v583_v38  ;;  %v900_v62 = vpop.f32.mrf.mxu2  ;;  %vm596_vm11 = vweird.f32 %v2468_v47  ;;  %v3157_v38 = vpop.f32.mrf.mxu3 }
 0x167   : > { %v2470_v0 = vpop.eup %2469  ;;  %v930_v6 = vmul.f32 0.03125, %v900_v62  ;;  %vm597_vm15 = vmor %vm595_vm14, %vm596_vm11 }
 0x168   : > { %v588_v57 = vsel %vm587_vm10, %v2466_v51, %v584_v60  ;;  %v970_v55 = vmul.f32 %v2470_v0, %v961_v39  ;;  %v591_v12 = vmul.f32 %v2468_v47, %v590_v17  ;;  %vm976_vm13 = vweird.f32 %v2470_v0 }
 0x169   : > { %2218 = vmatmul.msk.f32.gmra.mxu3 %vm599_vm2, %v588_v57  ;;  %v946_v43 = vsub.f32 %v930_v6, %v938_v58  ;;  %vm977_vm3 = vmor %vm975_vm12, %vm976_vm13  ;;  %v3160_v57 = vmul.f32 0.03125, %v857_v7 }
 0x16a   : > { %v971_v63 = vmul.f32 %v2470_v0, %v970_v55  ;;  %v592_v18 = vmul.f32 0.5, %v591_v12  ;;  %v860_v55 = vpop.f32.mrf.mxu1  ;;  %2287 = vmatmul.msk.f32.gmra.mxu2 %vm311_vm0, %v2719_v9 }
 0x16b   : > { %v954_v54 = vmax.f32 %v946_v43, 0.0 }
 0x16c   : > { %v972_v51 = vmul.f32 0.5, %v971_v63  ;;  %v593_v2 = vsub.f32 1.5, %v592_v18  ;;  %v940_v63 = vmul.f32 %v3160_v57, %v3160_v57 }
 0x16d   : > { %v962_v50 = vadd.f32 1e-05, %v954_v54 }
 0x16e   : > { %v594_v58 = vmul.f32 %v2468_v47, %v593_v2  ;;  %v903_v17 = vpop.f32.mrf.mxu2  ;;  %v973_v60 = vsub.f32 1.5, %v972_v51  ;;  %v3171_v54 = vpop.f32.mrf.mxu3  ;;  %v3174_v2 = vmul.f32 0.03125, %v860_v55 }
 0x16f   : > { %2471 = vrsqrt.f32 %v962_v50  ;;  %v931_v62 = vmul.f32 0.03125, %v903_v17  ;;  %vm985_vm4 = vweird.f32 %v962_v50 }
 0x170   : > { %v598_v6 = vsel %vm597_vm15, %v2468_v47, %v594_v58  ;;  %v974_v8 = vmul.f32 %v2470_v0, %v973_v60  ;;  %v879_v47 = vmul.f32 %v3120_v59, %v3120_v59 }
 0x171   : > { %2219 = vmatmul.msk.f32.gmra.mxu3 %vm599_vm2, %v598_v6  ;;  %v947_v39 = vsub.f32 %v931_v62, %v939_v46  ;;  %v2323_v46 = vld [vmem:[%s3709_s1 + $0x78] sm:$0xff] }
 0x172   : > { %v978_v14 = vsel %vm977_vm3, %v2470_v0, %v974_v8  ;;  %1677 = vmatpush.msrb.mxu2 %v2323_v46  ;;  %v863_v62 = vpop.f32.mrf.mxu1 }
 0x173   : > { %v955_v12 = vmax.f32 %v947_v39, 0.0  ;;  %2254 = vmatmul.msk.f32.vlgmr.msrb.gmra.mxu0 %vm599_vm2, %v978_v14  ;;  %2288 = vmatmul.msk.f32.gmra.mxu2 %vm311_vm0, %v2726_v10 }
 0x174   : > { %1760 = vmatpush.msrb.mxu0 %v2775_v19 }
 0x175   : > { %v2472_v43 = vpop.eup %2471  ;;  %v963_v42 = vadd.f32 1e-05, %v955_v12 }
 0x176   : > { %v980_v7 = vmul.f32 %v2472_v43, %v962_v50  ;;  %v906_v18 = vpop.f32.mrf.mxu2  ;;  %1761 = vmatpush.msrb.mxu0 %v2780_v20  ;;  %vm986_vm5 = vweird.f32 %v2472_v43  ;;  %v941_v50 = vmul.f32 %v3174_v2, %v3174_v2 }
 0x177   : > { %2473 = vrsqrt.f32 %v963_v42  ;;  %v932_v0 = vmul.f32 0.03125, %v906_v18  ;;  %vm987_vm6 = vmor %vm985_vm4, %vm986_vm5  ;;  %vm995_vm7 = vweird.f32 %v963_v42 }
 0x178   : > { %v981_v51 = vmul.f32 %v2472_v43, %v980_v7  ;;  %1762 = vmatpush.msrb.mxu0 %v2787_v21 }
 0x179   : > { %917 = vmatmul.f32.vlgmr.msra.gmra.mxu3 %v879_v47  ;;  %v948_v9 = vsub.f32 %v932_v0, %v940_v63  ;;  %v3196_v47 = vmul.f32 0.03125, %v863_v62  ;;  %v3198_v63 = vpop.f32.mrf.mxu3 }
 0x17a   : > { %v982_v58 = vmul.f32 0.5, %v981_v51  ;;  %1320 = vmatpush.msra.mxu3 %v2775_v19  ;;  %1763 = vmatpush.msrb.mxu0 %v2794_v22 }
 0x17b   : > { %v956_v17 = vmax.f32 %v948_v9, 0.0  ;;  %2289 = vmatmul.msk.f32.gmra.mxu2 %vm311_vm0, %v2733_v11  ;;  %v942_v18 = vmul.f32 %v3196_v47, %v3196_v47  ;;  %v866_v9 = vpop.f32.mrf.mxu1 }
 0x17c   : > { %v983_v60 = vsub.f32 1.5, %v982_v58  ;;  %1321 = vmatpush.msra.mxu3 %v2780_v20  ;;  %1764 = vmatpush.msrb.mxu0 %v2810_v24 }
 0x17d   : > { %v2474_v6 = vpop.eup %2473  ;;  %v3184_v8 = vadd.f32 1e-05, %v956_v17  ;;  %v3222_v17 = vmul.f32 0.03125, %v866_v9 }
 0x17e   : > { %v990_v19 = vmul.f32 %v2474_v6, %v963_v42  ;;  %v909_v39 = vpop.f32.mrf.mxu2  ;;  %v984_v14 = vmul.f32 %v2472_v43, %v983_v60  ;;  %1322 = vmatpush.msra.mxu3 %v2787_v21  ;;  %1765 = vmatpush.msrb.mxu0 %v2815_v25  ;;  %vm996_vm8 = vweird.f32 %v2474_v6 }
 0x17f   : > { %2475 = vrsqrt.f32 %v3184_v8  ;;  %v933_v10 = vmul.f32 0.03125, %v909_v39  ;;  %vm3208_vm9 = vmor %vm995_vm7, %vm996_vm8  ;;  %vm1005_vm10 = vweird.f32 %v3184_v8 }
 0x180   : > { %v988_v20 = vsel %vm987_vm6, %v2472_v43, %v984_v14  ;;  %v991_v55 = vmul.f32 %v2474_v6, %v990_v19  ;;  %1323 = vmatpush.msra.mxu3 %v2794_v22  ;;  %1766 = vmatpush.msrb.mxu0 %v2822_v26 }
 0x181   : > { %2245 = vmatmul.msk.f32.vlgmr.msrb.gmra.mxu3 %vm599_vm2, %v3130_v4  ;;  %v949_v12 = vsub.f32 %v933_v10, %v941_v50  ;;  %2255 = vmatmul.msk.f32.gmra.mxu0 %vm599_vm2, %v988_v20 }
 0x182   : > { %v992_v21 = vmul.f32 0.5, %v991_v55  ;;  %1324 = vmatpush.msra.mxu3 %v2810_v24  ;;  %1767 = vmatpush.msrb.mxu0 %v2829_v27  ;;  %v3247_v55 = vld [vmem:[%s2709_s20 + $0x28] sm:$0xff] }
 0x183   : > { %v957_v43 = vmax.f32 %v949_v12, 0.0  ;;  %2290 = vmatmul.msk.f32.gmra.mxu2 %vm311_vm0, %v2752_v16  ;;  %v869_v9 = vpop.f32.mrf.mxu1 }
 0x184   : > { %v993_v22 = vsub.f32 1.5, %v992_v21  ;;  %1325 = vmatpush.msra.mxu3 %v2815_v25  ;;  %1768 = vmatpush.msrb.mxu0 %v2840_v28 }
 0x185   : > { %v2476_v4 = vpop.eup %2475  ;;  %v965_v7 = vadd.f32 1e-05, %v957_v43 }
 0x186   : > { %v1000_v24 = vmul.f32 %v2476_v4, %v3184_v8  ;;  %v912_v0 = vpop.f32.mrf.mxu2  ;;  %v994_v51 = vmul.f32 %v2474_v6, %v993_v22  ;;  %1326 = vmatpush.msra.mxu3 %v2822_v26  ;;  %1769 = vmatpush.msrb.mxu0 %v2845_v29  ;;  %v2322_v26 = vld [vmem:[%s3709_s1 + $0x70] sm:$0xff]  ;;  %vm1006_vm11 = vweird.f32 %v2476_v4  ;;  %v943_v8 = vmul.f32 %v3222_v17, %v3222_v17 }
 0x187   : > { %2477 = vrsqrt.f32 %v965_v7  ;;  %v934_v11 = vmul.f32 0.03125, %v912_v0  ;;  %1678 = vmatpush.msrb.mxu2 %v2322_v26  ;;  %vm1007_vm12 = vmor %vm1005_vm10, %vm1006_vm11  ;;  %vm1015_vm13 = vweird.f32 %v965_v7 }
 0x188   : > { %v998_v25 = vsel %vm3208_vm9, %v2474_v6, %v994_v51  ;;  %v1001_v46 = vmul.f32 %v2476_v4, %v1000_v24  ;;  %1327 = vmatpush.msra.mxu3 %v2829_v27  ;;  %1770 = vmatpush.msrb.mxu0 %v2852_v30 }
 0x189   : > { %2246 = vmatmul.msk.f32.gmra.mxu3 %vm599_vm2, %v3140_v23  ;;  %v950_v58 = vsub.f32 %v934_v11, %v942_v18  ;;  %2256 = vmatmul.msk.f32.gmra.mxu0 %vm599_vm2, %v998_v25  ;;  %v3232_v23 = vpop.f32.mrf.mxu3  ;;  %v3275_v25 = vld [vmem:[%s2709_s20 + $0x38] sm:$0xff] }
 0x18a   : > { %v1002_v60 = vmul.f32 0.5, %v1001_v46  ;;  %1328 = vmatpush.msra.mxu3 %v2840_v28  ;;  %1771 = vmatpush.msrb.mxu0 %v2859_v31 }
 0x18b   : > { %v958_v27 = vmax.f32 %v950_v58, 0.0  ;;  %2291 = vmatmul.msk.f32.gmra.mxu2 %vm311_vm0, %v3247_v55 }
 0x18c   : > { %v1003_v62 = vsub.f32 1.5, %v1002_v60  ;;  %1329 = vmatpush.msra.mxu3 %v2845_v29  ;;  %1772 = vmatpush.msrb.mxu0 %v2870_v32  ;;  %v2320_v60 = vld [vmem:[%s3709_s1 + $0x60] sm:$0xff] }
 0x18d   : > { %v2478_v6 = vpop.eup %2477  ;;  %v966_v50 = vadd.f32 1e-05, %v958_v27  ;;  %v3287_v27 = vpop.f32.mrf.mxu1 }
 0x18e   : > { %v1010_v28 = vmul.f32 %v2478_v6, %v965_v7  ;;  %v915_v19 = vpop.f32.mrf.mxu2  ;;  %v1004_v39 = vmul.f32 %v2476_v4, %v1003_v62  ;;  %1330 = vmatpush.msra.mxu3 %v2852_v30  ;;  %vm1016_vm14 = vweird.f32 %v2478_v6  ;;  %1773 = vmatpush.msrb.mxu0 %v2875_v33  ;;  %v3290_v62 = vld [vmem:[%s2709_s20] sm:$0xff] }
 0x18f   : > { %2479 = vrsqrt.f32 %v966_v50  ;;  %v935_v16 = vmul.f32 0.03125, %v915_v19  ;;  %vm1017_vm15 = vmor %vm1015_vm13, %vm1016_vm14  ;;  %vm1025_vm3 = vweird.f32 %v966_v50 }
 0x190   : > { %v1008_v14 = vsel %vm1007_vm12, %v2476_v4, %v1004_v39  ;;  %v1011_v29 = vmul.f32 %v2478_v6, %v1010_v28  ;;  %1331 = vmatpush.msra.mxu3 %v2859_v31  ;;  %1774 = vmatpush.msrb.mxu0 %v2888_v34  ;;  %v3324_v39 = vld [vmem:[%s3714_s6] ss:$0 sm:$0xff] }
 0x191   : > { %2247 = vmatmul.msk.f32.gmra.mxu3 %vm599_vm2, %v3148_v3  ;;  %v951_v10 = vsub.f32 %v935_v16, %v943_v8  ;;  %2257 = vmatmul.msk.f32.gmra.mxu0 %vm599_vm2, %v1008_v14  ;;  %v3253_v21 = vpop.f32.mrf.mxu3  ;;  %v1312_v16 = vmul.f32 %v3287_v27, %v3287_v27  ;;  %v3329_v14 = vld [vmem:[%s2709_s20 + $0x10] sm:$0xff] }
 0x192   : > { %v1012_v20 = vmul.f32 0.5, %v1011_v29  ;;  %1332 = vmatpush.msra.mxu3 %v2870_v32  ;;  %1775 = vmatpush.msrb.mxu0 %v2895_v35 }
 0x193   : > { %v959_v30 = vmax.f32 %v951_v10, 0.0  ;;  %v735_v10 = vsub.f32 %v2944_v41, %v3171_v54 }
 0x194   : > { %v1013_v31 = vsub.f32 1.5, %v1012_v20  ;;  %1333 = vmatpush.msra.mxu3 %v2875_v33  ;;  %v2321_v33 = vld [vmem:[%s3709_s1 + $0x68] sm:$0xff] }
 0x195   : > { %v2480_v3 = vpop.eup %2479  ;;  %v967_v12 = vadd.f32 1e-05, %v959_v30  ;;  %1679 = vmatpush.msrb.mxu2 %v2321_v33  ;;  %v3307_v8 = vpop.f32.mrf.mxu1  ;;  %v3359_v33 = vld [vmem:[%s2709_s20 + $0x20] sm:$0xff] }
 0x196   : > { %v1020_v32 = vmul.f32 %v2480_v3, %v966_v50  ;;  %v1014_v43 = vmul.f32 %v2478_v6, %v1013_v31  ;;  %1334 = vmatpush.msra.mxu3 %v2888_v34  ;;  %vm1026_vm4 = vweird.f32 %v2480_v3  ;;  %v3265_v34 = vld [vmem:[%s2709_s20 + $0x30] sm:$0xff]  ;;  %v3303_v50 = vld [vmem:[%s2709_s20 + $0x8] sm:$0xff]  ;;  %v1313_v31 = vmul.f32 %v3307_v8, %v3307_v8 }
 0x197   : > { %2481 = vrsqrt.f32 %v967_v12  ;;  %2292 = vmatmul.msk.f32.gmra.mxu2 %vm311_vm0, %v3265_v34  ;;  %vm1027_vm5 = vmor %vm1025_vm3, %vm1026_vm4  ;;  %vm1035_vm6 = vweird.f32 %v967_v12 }
 0x198   : > { %v1018_v22 = vsel %vm1017_vm15, %v2478_v6, %v1014_v43  ;;  %v1021_v4 = vmul.f32 %v2480_v3, %v1020_v32  ;;  %1335 = vmatpush.msra.mxu3 %v2895_v35  ;;  %1680 = vmatpush.msrb.mxu2 %v2320_v60  ;;  %v3300_v6 = vmul.f32 0.03125, %v869_v9  ;;  %v736_v32 = vsub.f32 %v2956_v45, %v3198_v63 }
 0x199   : > { %2248 = vmatmul.msk.f32.gmra.mxu3 %vm599_vm2, %v3160_v57  ;;  %2258 = vmatmul.msk.f32.gmra.mxu0 %vm599_vm2, %v1018_v22  ;;  %v3269_v24 = vpop.f32.mrf.mxu3  ;;  %v737_v45 = vsub.f32 %v2968_v49, %v3232_v23  ;;  %v738_v49 = vsub.f32 %v2980_v53, %v3253_v21 }
 0x19a   : > { %v1022_v7 = vmul.f32 0.5, %v1021_v4  ;;  %2353 = vmatpush.msk.msra.mxu2 %vm624_vm1, %v2900_v36  ;;  %v734_v36 = vsub.f32 %v2933_v37, %v3157_v38  ;;  %v739_v53 = vsub.f32 %v3002_v61, %v3269_v24 }
 0x19c   : > { %v1023_v35 = vsub.f32 1.5, %v1022_v7 }
 0x19d   : > { %v2482_v18 = vpop.eup %2481  ;;  %v3334_v38 = vpop.f32.mrf.mxu1 }
 0x19e   : > { %v1030_v57 = vmul.f32 %v2482_v18, %v967_v12  ;;  %v1024_v42 = vmul.f32 %v2480_v3, %v1023_v35  ;;  %vm1036_vm7 = vweird.f32 %v2482_v18  ;;  %v1314_v4 = vmul.f32 %v3334_v38, %v3334_v38 }
 0x19f   : > { %2293 = vmatmul.msk.f32.gmra.mxu2 %vm311_vm0, %v3275_v25  ;;  %vm1037_vm8 = vmor %vm1035_vm6, %vm1036_vm7 }
 0x1a0   : > { %v1028_v0 = vsel %vm1027_vm5, %v2480_v3, %v1024_v42  ;;  %v1031_v51 = vmul.f32 %v2482_v18, %v1030_v57  ;;  %v3345_v3 = vld [vmem:[%s2709_s20 + $0x18] sm:$0xff]  ;;  %s2377_s20 = sshll.u32 %s2654_s28, 8  ;;  %s2101_s28 = scalar_lea.sflag [#allocation3], %s270_s15 }
 0x1a1   : > { %2249 = vmatmul.msk.f32.gmra.mxu3 %vm599_vm2, %v3174_v2  ;;  %2259 = vmatmul.msk.f32.gmra.mxu0 %vm599_vm2, %v1028_v0  ;;  %v3282_v2 = vpop.f32.mrf.mxu3  ;;  %s2113_s8 = scalar_lea.hbm %s3715_s7, %s2377_s20 }
 0x1a2   : > { %v1032_v11 = vmul.f32 0.5, %v1031_v51  ;;  %v740_v61 = vsub.f32 %v3012_v1, %v3282_v2  ;;  %v2334_v2 = vld [vmem:[%s3710_s2 + $0x70] sm:$0xff]  ;;  %s2116_s13 = sshll.u32 %s2113_s8, 4  ;;  %s2117_s13 = int_to_ptr.hbm [resolvable:$true] %s2116_s13 }
 0x1a3   : > { %s2541_s14 = sshra.s32 %s2117_s13, 4  ;;  %s2542_s14 = int_to_ptr.hbm [resolvable:$true] %s2541_s14 }
 0x1a4   : > { %v1033_v46 = vsub.f32 1.5, %v1032_v11  ;;  %s2543_s16 = scalar_lea.hbm %s2542_s14, 256  ;;  %p2548_p0 = scmp.lt.s32.totalorder %s2542_s14, %s3715_s7 }
 0x1a5   : > { %v3351_v54 = vpop.f32.mrf.mxu1  ;;  %p2544_p11 = scmp.ne.s32.totalorder %s2542_s14, %s2543_s16  ;;  %p2549_p1 = scmp.lt.s32.totalorder %s2547_s19, %s2543_s16 }
 0x1a6   : > { %v1034_v58 = vmul.f32 %v2482_v18, %v1033_v46  ;;  %v1315_v42 = vmul.f32 %v3351_v54, %v3351_v54 }
 0x1a7   : > { %2324 = vmatmul.msk.f32.vlgmr.msrb.gmra.mxu2 %vm311_vm0, %v3290_v62  ;;  %p2545_p12 = pnand %p2544_p11, %p2671_p5  ;;  %p2550_p2 = por %p2549_p1, %p2548_p0 }
 0x1a8   : > { %v1038_v26 = vsel %vm1037_vm8, %v2482_v18, %v1034_v58 }
 0x1a9   : > { %2250 = vmatmul.msk.f32.gmra.mxu3 %vm599_vm2, %v3196_v47  ;;  %2260 = vmatmul.msk.f32.gmra.mxu0 %vm599_vm2, %v1038_v26  ;;  %v3298_v47 = vpop.f32.mrf.mxu3  ;;  %p2546_p13 = pneg %p2545_p12 }
 0x1aa   : > { %v741_v1 = vsub.f32 %v3022_v5, %v3298_v47  ;;  %v2332_v5 = vld [vmem:[%s3710_s2 + $0x60] sm:$0xff] }
 0x1ab   : > { %p2551_p3 = pnand %p2550_p2, %p2546_p13 }
 0x1ad   : > { %v3368_v18 = vpop.f32.mrf.mxu1 }
 0x1ae   : > { %v1316_v11 = vmul.f32 %v3368_v18, %v3368_v18 }
 0x1af   : > { %2325 = vmatmul.msk.f32.gmra.mxu2 %vm311_vm0, %v3303_v50 }
 0x1b1   : > { %2251 = vmatmul.msk.f32.gmra.mxu3 %vm599_vm2, %v3222_v17  ;;  %v3317_v17 = vld [vmem:[%s3713_s5] ss:$0 sm:$0xff] }
 0x1b5   : > { %v3383_v46 = vpop.f32.mrf.mxu1 }
 0x1b7   : > { %2326 = vmatmul.msk.f32.gmra.mxu2 %vm311_vm0, %v3329_v14 }
 0x1b9   : > { %2252 = vmatmul.msk.f32.gmra.mxu3 %vm599_vm2, %v3300_v6 }
 0x1bc   : > { %v710_v28 = vpop.f32.mrf.mxu3 }
 0x1bd   : > { %v742_v19 = vmul.f32 %v734_v36, %v710_v28  ;;  %v1317_v36 = vmul.f32 %v3383_v46, %v3383_v46 }
 0x1bf   : > { %v753_v37 = vmul.f32 %v3317_v17, %v742_v19  ;;  %2327 = vmatmul.msk.f32.gmra.mxu2 %vm311_vm0, %v3345_v3  ;;  %v3395_v19 = vpop.f32.mrf.mxu1 }
 0x1c1   : > { %v764_v29 = vadd.f32 %v3324_v39, %v753_v37  ;;  %1336 = vmatmul.f32.vlgmr.msra.gmra.mxu3 %v1312_v16 }
 0x1c3   : > { %772 = vst [vmem:[%s3339_s22] sm:$0xff] %v764_v29  ;;  %v1318_v29 = vmul.f32 %v3395_v19, %v3395_v19 }
 0x1c4   : > { %v713_v20 = vpop.f32.mrf.mxu3 }
 0x1c5   : > { %v743_v30 = vmul.f32 %v735_v10, %v713_v20 }
 0x1c7   : > { %v754_v12 = vmul.f32 %v3317_v17, %v743_v30  ;;  %2328 = vmatmul.msk.f32.gmra.mxu2 %vm311_vm0, %v3359_v33  ;;  %v2335_v30 = vld [vmem:[%s3710_s2 + $0x78] sm:$0xff] }
 0x1c8   : > { %1723 = vmatpush.msrb.mxu3 %v2335_v30 }
 0x1c9   : > { %v765_v41 = vadd.f32 %v3324_v39, %v754_v12  ;;  %1339 = vmatmul.f32.gmra.mxu3 %v1313_v31  ;;  %v3408_v31 = vpop.f32.mrf.mxu1 }
 0x1ca   : > { %1724 = vmatpush.msrb.mxu3 %v2334_v2 }
 0x1cb   : > { %773 = vst [vmem:[%s3339_s22 + $0x20] sm:$0xff] %v765_v41 }
 0x1cc   : > { %v716_v43 = vpop.f32.mrf.mxu3 }
 0x1cd   : > { %v744_v22 = vmul.f32 %v736_v32, %v716_v43  ;;  %v1319_v32 = vmul.f32 %v3408_v31, %v3408_v31  ;;  %v2333_v43 = vld [vmem:[%s3710_s2 + $0x68] sm:$0xff] }
 0x1ce   : > { %1725 = vmatpush.msrb.mxu3 %v2333_v43 }
 0x1cf   : > { %v755_v7 = vmul.f32 %v3317_v17, %v744_v22  ;;  %2329 = vmatmul.msk.f32.gmra.mxu2 %vm311_vm0, %v3247_v55 }
 0x1d0   : > { %1726 = vmatpush.msrb.mxu3 %v2332_v5 }
 0x1d1   : > { %v766_v35 = vadd.f32 %v3324_v39, %v755_v7  ;;  %1342 = vmatmul.f32.gmra.mxu3 %v1314_v4  ;;  %v944_v7 = vmul.f32 %v3300_v6, %v3300_v6 }
 0x1d3   : > { %774 = vst [vmem:[%s3339_s22 + $0x40] sm:$0xff] %v766_v35 }
 0x1d4   : > { %v719_v63 = vpop.f32.mrf.mxu3 }
 0x1d5   : > { %v745_v57 = vmul.f32 %v737_v45, %v719_v63 }
 0x1d7   : > { %v756_v0 = vmul.f32 %v3317_v17, %v745_v57  ;;  %2330 = vmatmul.msk.f32.gmra.mxu2 %vm311_vm0, %v3265_v34 }
 0x1d9   : > { %v767_v51 = vadd.f32 %v3324_v39, %v756_v0  ;;  %1345 = vmatmul.f32.gmra.mxu3 %v1315_v42 }
 0x1db   : > { %775 = vst [vmem:[%s3339_s22 + $0x60] sm:$0xff] %v767_v51 }
 0x1dc   : > { %v722_v23 = vpop.f32.mrf.mxu3 }
 0x1dd   : > { %v746_v9 = vmul.f32 %v738_v49, %v722_v23 }
 0x1df   : > { %v757_v58 = vmul.f32 %v3317_v17, %v746_v9  ;;  %2331 = vmatmul.msk.f32.gmra.mxu2 %vm311_vm0, %v3275_v25 }
 0x1e1   : > { %v768_v26 = vadd.f32 %v3324_v39, %v757_v58  ;;  %1348 = vmatmul.f32.gmra.mxu3 %v1316_v11 }
 0x1e3   : > { %776 = vst [vmem:[%s3339_s22 + $0x80] sm:$0xff] %v768_v26 }
 0x1e4   : > { %v725_v21 = vpop.f32.mrf.mxu3 }
 0x1e5   : > { %v747_v60 = vmul.f32 %v739_v53, %v725_v21  ;;  %v1288_v45 = vpop.f32.mrf.mxu2 }
 0x1e7   : > { %v758_v28 = vmul.f32 %v3317_v17, %v747_v60 }
 0x1e9   : > { %v769_v16 = vadd.f32 %v3324_v39, %v758_v28  ;;  %1351 = vmatmul.f32.gmra.mxu3 %v1317_v36 }
 0x1eb   : > { %777 = vst [vmem:[%s3339_s22 + $0xa0] sm:$0xff] %v769_v16 }
 0x1ec   : > { %v728_v24 = vpop.f32.mrf.mxu3 }
 0x1ed   : > { %v748_v37 = vmul.f32 %v740_v61, %v728_v24  ;;  %v1291_v23 = vpop.f32.mrf.mxu2 }
 0x1ef   : > { %v759_v10 = vmul.f32 %v3317_v17, %v748_v37 }
 0x1f0   : > { %v1155_v47 = vpop.f32.mrf.mxu0 }
 0x1f1   : > { %v770_v20 = vadd.f32 %v3324_v39, %v759_v10  ;;  %1354 = vmatmul.f32.gmra.mxu3 %v1318_v29 }
 0x1f3   : > { %778 = vst [vmem:[%s3339_s22 + $0xc0] sm:$0xff] %v770_v20 }
 0x1f4   : > { %v731_v12 = vpop.f32.mrf.mxu3 }
 0x1f5   : > { %v749_v41 = vmul.f32 %v741_v1, %v731_v12  ;;  %v1361_v12 = vmul.f32 0.03125, %v1288_v45 }
 0x1f6   : > { %v1294_v28 = vpop.f32.mrf.mxu2 }
 0x1f7   : > { %v760_v22 = vmul.f32 %v3317_v17, %v749_v41 }
 0x1f9   : > { %v771_v4 = vadd.f32 %v3324_v39, %v760_v22  ;;  %1357 = vmatmul.f32.gmra.mxu3 %v1319_v32 }
 0x1fb   : > { %779 = vst [vmem:[%s3339_s22 + $0xe0] sm:$0xff] %v771_v4 }
 0x1fc   : > { %v918_v35 = vpop.f32.mrf.mxu3 }
 0x1fd   : > { %v936_v63 = vmul.f32 0.03125, %v918_v35 }
 0x1fe   : > { %v1158_v0 = vpop.f32.mrf.mxu0  ;;  %v1297_v1 = vpop.f32.mrf.mxu2 }
 0x1ff   : > { %v952_v57 = vsub.f32 %v936_v63, %v944_v7  ;;  %v1363_v63 = vmul.f32 0.03125, %v1294_v28 }
 0x201   : > { %v960_v42 = vmax.f32 %v952_v57, 0.0  ;;  %2336 = vmatmul.msk.f32.vlgmr.msrb.gmra.mxu3 %vm311_vm0, %v3290_v62 }
 0x203   : > { %v968_v51 = vadd.f32 1e-05, %v960_v42 }
 0x204   : > { %v1090_v49 = vpop.f32.mrf.mxu3 }
 0x205   : > { %2483 = vrsqrt.f32 %v968_v51  ;;  %v1179_v9 = vsub.f32 %v3032_v13, %v1090_v49  ;;  %vm1045_vm9 = vweird.f32 %v968_v51  ;;  %v1364_v49 = vmul.f32 0.03125, %v1297_v1 }
 0x206   : > { %v1161_v62 = vpop.f32.mrf.mxu0  ;;  %v1300_v5 = vpop.f32.mrf.mxu2 }
 0x207   : > { %v1187_v11 = vmul.f32 %v1179_v9, %v1155_v47  ;;  %v1362_v47 = vmul.f32 0.03125, %v1291_v23 }
 0x209   : > { %v1195_v6 = vmul.f32 %v3317_v17, %v1187_v11  ;;  %2337 = vmatmul.msk.f32.gmra.mxu3 %vm311_vm0, %v3303_v50 }
 0x20b   : > { %v2484_v58 = vpop.eup %2483  ;;  %v1203_v26 = vadd.f32 %v3324_v39, %v1195_v6 }
 0x20c   : > { %v1040_v53 = vmul.f32 %v2484_v58, %v968_v51  ;;  %v1093_v21 = vpop.f32.mrf.mxu3  ;;  %vm1046_vm1 = vweird.f32 %v2484_v58 }
 0x20d   : > { %2262 = vst [vmem:[%s3339_s22 + $0x8] sm:$0xff] %v1203_v26  ;;  %v1180_v60 = vsub.f32 %v3040_v15, %v1093_v21  ;;  %vm1047_vm10 = vmor %vm1045_vm9, %vm1046_vm1 }
 0x20e   : > { %v1041_v36 = vmul.f32 %v2484_v58, %v1040_v53  ;;  %v1164_v20 = vpop.f32.mrf.mxu0  ;;  %v1303_v42 = vpop.f32.mrf.mxu2 }
 0x20f   : > { %v1188_v16 = vmul.f32 %v1180_v60, %v1158_v0  ;;  %v3484_v21 = vmul.f32 0.03125, %v1303_v42  ;;  %v1377_v60 = vmul.f32 %v1361_v12, %v1361_v12 }
 0x210   : > { %v1042_v13 = vmul.f32 0.5, %v1041_v36 }
 0x211   : > { %v1196_v61 = vmul.f32 %v3317_v17, %v1188_v16  ;;  %2338 = vmatmul.msk.f32.gmra.mxu3 %vm311_vm0, %v3329_v14 }
 0x212   : > { %v1043_v50 = vsub.f32 1.5, %v1042_v13 }
 0x213   : > { %v1204_v24 = vadd.f32 %v3324_v39, %v1196_v61 }
 0x214   : > { %v1096_v37 = vpop.f32.mrf.mxu3  ;;  %v1044_v29 = vmul.f32 %v2484_v58, %v1043_v50 }
 0x215   : > { %2263 = vst [vmem:[%s3339_s22 + $0x28] sm:$0xff] %v1204_v24  ;;  %v1181_v15 = vsub.f32 %v3046_v40, %v1096_v37  ;;  %v1378_v24 = vmul.f32 %v1362_v47, %v1362_v47 }
 0x216   : > { %v1048_v10 = vsel %vm1047_vm10, %v2484_v58, %v1044_v29  ;;  %v1167_v43 = vpop.f32.mrf.mxu0 }
 0x217   : > { %v1189_v30 = vmul.f32 %v1181_v15, %v1161_v62  ;;  %2261 = vmatmul.msk.f32.gmra.mxu0 %vm599_vm2, %v1048_v10 }
 0x219   : > { %v1197_v14 = vmul.f32 %v3317_v17, %v1189_v30  ;;  %2339 = vmatmul.msk.f32.gmra.mxu3 %vm311_vm0, %v3345_v3 }
 0x21a   : > { %v1306_v6 = vpop.f32.mrf.mxu2 }
 0x21b   : > { %v1205_v2 = vadd.f32 %v3324_v39, %v1197_v14  ;;  %v3490_v61 = vmul.f32 0.03125, %v1306_v6 }
 0x21c   : > { %v1099_v41 = vpop.f32.mrf.mxu3 }
 0x21d   : > { %2264 = vst [vmem:[%s3339_s22 + $0x48] sm:$0xff] %v1205_v2  ;;  %v1182_v40 = vsub.f32 %v3052_v44, %v1099_v41 }
 0x21e   : > { %v1170_v45 = vpop.f32.mrf.mxu0 }
 0x21f   : > { %v1190_v32 = vmul.f32 %v1182_v40, %v1164_v20  ;;  %2295 = vmatmul.msk.f32.vlgmr.msra.gmra.mxu0 %vm599_vm2, %v1361_v12  ;;  %v1379_v12 = vmul.f32 %v1363_v63, %v1363_v63 }
 0x221   : > { %v1198_v22 = vmul.f32 %v3317_v17, %v1190_v32  ;;  %2340 = vmatmul.msk.f32.gmra.mxu3 %vm311_vm0, %v3359_v33 }
 0x223   : > { %v1206_v3 = vadd.f32 %v3324_v39, %v1198_v22 }
 0x224   : > { %v1102_v4 = vpop.f32.mrf.mxu3 }
 0x225   : > { %2265 = vst [vmem:[%s3339_s22 + $0x68] sm:$0xff] %v1206_v3  ;;  %v1183_v7 = vsub.f32 %v3058_v48, %v1102_v4 }
 0x226   : > { %v1173_v9 = vpop.f32.mrf.mxu0 }
 0x227   : > { %v1191_v35 = vmul.f32 %v1183_v7, %v1167_v43  ;;  %2296 = vmatmul.msk.f32.gmra.mxu0 %vm599_vm2, %v1362_v47 }
 0x229   : > { %v1199_v44 = vmul.f32 %v3317_v17, %v1191_v35  ;;  %2341 = vmatmul.msk.f32.gmra.mxu3 %vm311_vm0, %v3247_v55 }
 0x22b   : > { %v1207_v33 = vadd.f32 %v3324_v39, %v1199_v44 }
 0x22c   : > { %v1105_v57 = vpop.f32.mrf.mxu3 }
 0x22d   : > { %2266 = vst [vmem:[%s3339_s22 + $0x88] sm:$0xff] %v1207_v33  ;;  %v1184_v0 = vsub.f32 %v3064_v52, %v1105_v57 }
 0x22f   : > { %v1192_v51 = vmul.f32 %v1184_v0, %v1170_v45  ;;  %2297 = vmatmul.msk.f32.gmra.mxu0 %vm599_vm2, %v1363_v63  ;;  %v1380_v45 = vmul.f32 %v1364_v49, %v1364_v49 }
 0x231   : > { %v1200_v48 = vmul.f32 %v3317_v17, %v1192_v51  ;;  %2342 = vmatmul.msk.f32.gmra.mxu3 %vm311_vm0, %v3265_v34  ;;  %v3477_v34 = vmul.f32 0.03125, %v1300_v5 }
 0x233   : > { %v1208_v55 = vadd.f32 %v3324_v39, %v1200_v48 }
 0x234   : > { %v1108_v23 = vpop.f32.mrf.mxu3 }
 0x235   : > { %2267 = vst [vmem:[%s3339_s22 + $0xa8] sm:$0xff] %v1208_v55  ;;  %v1185_v11 = vsub.f32 %v3068_v56, %v1108_v23  ;;  %v1309_v56 = vpop.f32.mrf.mxu2 }
 0x236   : > { %v3494_v30 = vmul.f32 0.03125, %v1309_v56 }
 0x237   : > { %v1193_v58 = vmul.f32 %v1185_v11, %v1173_v9  ;;  %2298 = vmatmul.msk.f32.gmra.mxu0 %vm599_vm2, %v1364_v49 }
 0x239   : > { %v1201_v52 = vmul.f32 %v3317_v17, %v1193_v58  ;;  %2343 = vmatmul.msk.f32.gmra.mxu3 %vm311_vm0, %v3275_v25 }
 0x23b   : > { %v1209_v26 = vadd.f32 %v3324_v39, %v1201_v52  ;;  %v1381_v52 = vmul.f32 %v3477_v34, %v3477_v34 }
 0x23c   : > { %v3479_v53 = vpop.f32.mrf.mxu3 }
 0x23d   : > { %2268 = vst [vmem:[%s3339_s22 + $0xc8] sm:$0xff] %v1209_v26  ;;  %v3488_v16 = vpop.f32.mrf.mxu2 }
 0x23e   : > { %v1752_v4 = vmul.f32 %v3488_v16, %v3488_v16 }
 0x23f   : > { %2299 = vmatmul.msk.f32.gmra.mxu0 %vm599_vm2, %v3477_v34 }
 0x244   : > { %v1337_v62 = vpop.f32.mrf.mxu3 }
 0x245   : > { %v1369_v36 = vmul.f32 0.03125, %v1337_v62  ;;  %v3496_v2 = vpop.f32.mrf.mxu2 }
 0x246   : > { %v1753_v49 = vmul.f32 %v3496_v2, %v3496_v2 }
 0x247   : > { %v1385_v28 = vsub.f32 %v1369_v36, %v1377_v60  ;;  %2300 = vmatmul.msk.f32.gmra.mxu0 %vm599_vm2, %v3484_v21 }
 0x249   : > { %v1393_v25 = vmax.f32 %v1385_v28, 0.0 }
 0x24b   : > { %v1401_v13 = vadd.f32 1e-05, %v1393_v25 }
 0x24c   : > { %v1340_v50 = vpop.f32.mrf.mxu3 }
 0x24d   : > { %2485 = vrsqrt.f32 %v1401_v13  ;;  %v1370_v37 = vmul.f32 0.03125, %v1340_v50  ;;  %vm1415_vm11 = vweird.f32 %v1401_v13  ;;  %v3502_v42 = vpop.f32.mrf.mxu2 }
 0x24e   : > { %v1754_v34 = vmul.f32 %v3502_v42, %v3502_v42 }
 0x24f   : > { %v1386_v29 = vsub.f32 %v1370_v37, %v1378_v24  ;;  %2301 = vmatmul.msk.f32.gmra.mxu0 %vm599_vm2, %v3490_v61 }
 0x251   : > { %v1394_v15 = vmax.f32 %v1386_v29, 0.0 }
 0x253   : > { %v2486_v10 = vpop.eup %2485  ;;  %v1402_v20 = vadd.f32 1e-05, %v1394_v15 }
 0x254   : > { %v1410_v1 = vmul.f32 %v2486_v10, %v1401_v13  ;;  %v1343_v14 = vpop.f32.mrf.mxu3  ;;  %vm1416_vm0 = vweird.f32 %v2486_v10 }
 0x255   : > { %2487 = vrsqrt.f32 %v1402_v20  ;;  %v1371_v41 = vmul.f32 0.03125, %v1343_v14  ;;  %vm1417_vm12 = vmor %vm1415_vm11, %vm1416_vm0  ;;  %vm1425_vm14 = vweird.f32 %v1402_v20  ;;  %v3510_v28 = vpop.f32.mrf.mxu2 }
 0x256   : > { %v1411_v40 = vmul.f32 %v2486_v10, %v1410_v1 }
 0x257   : > { %v1387_v32 = vsub.f32 %v1371_v41, %v1379_v12  ;;  %2302 = vmatmul.msk.f32.gmra.mxu0 %vm599_vm2, %v3494_v30 }
 0x258   : > { %v1412_v43 = vmul.f32 0.5, %v1411_v40 }
 0x259   : > { %v1395_v22 = vmax.f32 %v1387_v32, 0.0 }
 0x25a   : > { %v1413_v5 = vsub.f32 1.5, %v1412_v43 }
 0x25b   : > { %v2488_v3 = vpop.eup %2487  ;;  %v1403_v47 = vadd.f32 1e-05, %v1395_v22 }
 0x25c   : > { %v1420_v7 = vmul.f32 %v2488_v3, %v1402_v20  ;;  %v1346_v35 = vpop.f32.mrf.mxu3  ;;  %v1414_v44 = vmul.f32 %v2486_v10, %v1413_v5  ;;  %vm1426_vm13 = vweird.f32 %v2488_v3 }
 0x25d   : > { %2489 = vrsqrt.f32 %v1403_v47  ;;  %v1372_v33 = vmul.f32 0.03125, %v1346_v35  ;;  %vm1427_vm15 = vmor %vm1425_vm14, %vm1426_vm13  ;;  %vm1435_vm4 = vweird.f32 %v1403_v47  ;;  %v3517_v43 = vpop.f32.mrf.mxu2 }
 0x25e   : > { %v1421_v63 = vmul.f32 %v2488_v3, %v1420_v7  ;;  %v1418_v57 = vsel %vm1417_vm12, %v2486_v10, %v1414_v44  ;;  %v1382_v10 = vmul.f32 %v3484_v21, %v3484_v21  ;;  %v1755_v21 = vmul.f32 %v3510_v28, %v3510_v28 }
 0x25f   : > { %v1388_v0 = vsub.f32 %v1372_v33, %v1380_v45  ;;  %2304 = vmatmul.msk.f32.vlgmr.msrb.gmra.mxu1 %vm599_vm2, %v1418_v57  ;;  %1776 = vmatmul.f32.vlgmr.msrb.gmra.mxu0 %v1752_v4  ;;  %v1383_v7 = vmul.f32 %v3490_v61, %v3490_v61 }
 0x260   : > { %v1422_v51 = vmul.f32 0.5, %v1421_v63 }
 0x261   : > { %v1396_v48 = vmax.f32 %v1388_v0, 0.0 }
 0x262   : > { %v1423_v55 = vsub.f32 1.5, %v1422_v51 }
 0x263   : > { %v2490_v23 = vpop.eup %2489  ;;  %v1404_v9 = vadd.f32 1e-05, %v1396_v48 }
 0x264   : > { %v1430_v11 = vmul.f32 %v2490_v23, %v1403_v47  ;;  %v1349_v6 = vpop.f32.mrf.mxu3  ;;  %v1424_v58 = vmul.f32 %v2488_v3, %v1423_v55  ;;  %vm1436_vm3 = vweird.f32 %v2490_v23  ;;  %v1756_v55 = vmul.f32 %v3517_v43, %v3517_v43 }
 0x265   : > { %2491 = vrsqrt.f32 %v1404_v9  ;;  %v1373_v26 = vmul.f32 0.03125, %v1349_v6  ;;  %vm1437_vm5 = vmor %vm1435_vm4, %vm1436_vm3  ;;  %vm1445_vm7 = vweird.f32 %v1404_v9 }
 0x266   : > { %v1431_v56 = vmul.f32 %v2490_v23, %v1430_v11  ;;  %v1428_v62 = vsel %vm1427_vm15, %v2488_v3, %v1424_v58  ;;  %v1384_v11 = vmul.f32 %v3494_v30, %v3494_v30 }
 0x267   : > { %v1389_v60 = vsub.f32 %v1373_v26, %v1381_v52  ;;  %2305 = vmatmul.msk.f32.gmra.mxu1 %vm599_vm2, %v1428_v62  ;;  %1779 = vmatmul.f32.gmra.mxu0 %v1753_v49  ;;  %v3526_v49 = vpop.f32.mrf.mxu2 }
 0x268   : > { %v1432_v36 = vmul.f32 0.5, %v1431_v56 }
 0x269   : > { %v1397_v25 = vmax.f32 %v1389_v60, 0.0 }
 0x26a   : > { %v1433_v13 = vsub.f32 1.5, %v1432_v36 }
 0x26b   : > { %v2492_v50 = vpop.eup %2491  ;;  %v1405_v24 = vadd.f32 1e-05, %v1397_v25 }
 0x26c   : > { %v1440_v37 = vmul.f32 %v2492_v50, %v1404_v9  ;;  %v1352_v29 = vpop.f32.mrf.mxu3  ;;  %v1434_v15 = vmul.f32 %v2490_v23, %v1433_v13  ;;  %vm1446_vm6 = vweird.f32 %v2492_v50  ;;  %v1757_v13 = vmul.f32 %v3526_v49, %v3526_v49 }
 0x26d   : > { %2493 = vrsqrt.f32 %v1405_v24  ;;  %v1374_v20 = vmul.f32 0.03125, %v1352_v29  ;;  %vm1447_vm8 = vmor %vm1445_vm7, %vm1446_vm6  ;;  %vm1455_vm9 = vweird.f32 %v1405_v24 }
 0x26e   : > { %v1441_v1 = vmul.f32 %v2492_v50, %v1440_v37  ;;  %v1438_v14 = vsel %vm1437_vm5, %v2490_v23, %v1434_v15 }
 0x26f   : > { %v1390_v12 = vsub.f32 %v1374_v20, %v1382_v10  ;;  %2306 = vmatmul.msk.f32.gmra.mxu1 %vm599_vm2, %v1438_v14  ;;  %1782 = vmatmul.f32.gmra.mxu0 %v1754_v34  ;;  %v3533_v37 = vpop.f32.mrf.mxu2 }
 0x270   : > { %v1442_v41 = vmul.f32 0.5, %v1441_v1  ;;  %v1758_v1 = vmul.f32 %v3533_v37, %v3533_v37 }
 0x271   : > { %v1398_v40 = vmax.f32 %v1390_v12, 0.0 }
 0x272   : > { %v1443_v32 = vsub.f32 1.5, %v1442_v41 }
 0x273   : > { %v2494_v22 = vpop.eup %2493  ;;  %v1406_v5 = vadd.f32 1e-05, %v1398_v40 }
 0x274   : > { %v1450_v3 = vmul.f32 %v2494_v22, %v1405_v24  ;;  %v1355_v47 = vpop.f32.mrf.mxu3  ;;  %v1444_v4 = vmul.f32 %v2492_v50, %v1443_v32  ;;  %vm1456_vm1 = vweird.f32 %v2494_v22 }
 0x275   : > { %2495 = vrsqrt.f32 %v1406_v5  ;;  %v1375_v35 = vmul.f32 0.03125, %v1355_v47  ;;  %vm1457_vm10 = vmor %vm1455_vm9, %vm1456_vm1  ;;  %vm1465_vm11 = vweird.f32 %v1406_v5 }
 0x276   : > { %v1451_v44 = vmul.f32 %v2494_v22, %v1450_v3  ;;  %v1448_v45 = vsel %vm1447_vm8, %v2492_v50, %v1444_v4 }
 0x277   : > { %v1391_v33 = vsub.f32 %v1375_v35, %v1383_v7  ;;  %2307 = vmatmul.msk.f32.gmra.mxu1 %vm599_vm2, %v1448_v45  ;;  %1785 = vmatmul.f32.gmra.mxu0 %v1755_v21  ;;  %v3539_v32 = vpop.f32.mrf.mxu2  ;;  %v1186_v21 = vsub.f32 %v3120_v59, %v3479_v53 }
 0x278   : > { %v1452_v63 = vmul.f32 0.5, %v1451_v44  ;;  %v1759_v3 = vmul.f32 %v3539_v32, %v3539_v32 }
 0x279   : > { %v1399_v57 = vmax.f32 %v1391_v33, 0.0 }
 0x27a   : > { %v1453_v0 = vsub.f32 1.5, %v1452_v63 }
 0x27b   : > { %v2496_v51 = vpop.eup %2495  ;;  %v1407_v48 = vadd.f32 1e-05, %v1399_v57 }
 0x27c   : > { %v1460_v23 = vmul.f32 %v2496_v51, %v1406_v5  ;;  %v1358_v61 = vpop.f32.mrf.mxu3  ;;  %v1454_v9 = vmul.f32 %v2494_v22, %v1453_v0  ;;  %vm1466_vm0 = vweird.f32 %v2496_v51 }
 0x27d   : > { %2497 = vrsqrt.f32 %v1407_v48  ;;  %v1376_v6 = vmul.f32 0.03125, %v1358_v61  ;;  %vm1467_vm12 = vmor %vm1465_vm11, %vm1466_vm0  ;;  %vm1475_vm14 = vweird.f32 %v1407_v48 }
 0x27e   : > { %v1461_v58 = vmul.f32 %v2496_v51, %v1460_v23  ;;  %v1458_v52 = vsel %vm1457_vm10, %v2494_v22, %v1454_v9 }
 0x27f   : > { %v1392_v26 = vsub.f32 %v1376_v6, %v1384_v11  ;;  %2308 = vmatmul.msk.f32.gmra.mxu1 %vm599_vm2, %v1458_v52  ;;  %1788 = vmatmul.f32.gmra.mxu0 %v1756_v55 }
 0x280   : > { %v1462_v56 = vmul.f32 0.5, %v1461_v58 }
 0x281   : > { %v1400_v62 = vmax.f32 %v1392_v26, 0.0 }
 0x282   : > { %v1463_v60 = vsub.f32 1.5, %v1462_v56 }
 0x283   : > { %v2498_v36 = vpop.eup %2497  ;;  %v1408_v25 = vadd.f32 1e-05, %v1400_v62 }
 0x284   : > { %v1470_v50 = vmul.f32 %v2498_v36, %v1407_v48  ;;  %v1464_v30 = vmul.f32 %v2496_v51, %v1463_v60  ;;  %vm1476_vm13 = vweird.f32 %v2498_v36  ;;  %v1728_v10 = vpop.f32.mrf.mxu3 }
 0x285   : > { %2499 = vrsqrt.f32 %v1408_v25  ;;  %vm1477_vm15 = vmor %vm1475_vm14, %vm1476_vm13  ;;  %vm1485_vm4 = vweird.f32 %v1408_v25  ;;  %v1801_v63 = vmul.f32 0.03125, %v1728_v10 }
 0x286   : > { %v1471_v24 = vmul.f32 %v2498_v36, %v1470_v50  ;;  %v1468_v34 = vsel %vm1467_vm12, %v2496_v51, %v1464_v30 }
 0x287   : > { %2309 = vmatmul.msk.f32.gmra.mxu1 %vm599_vm2, %v1468_v34  ;;  %1791 = vmatmul.f32.gmra.mxu0 %v1757_v13  ;;  %v1817_v30 = vmul.f32 %v1801_v63, %v1801_v63 }
 0x288   : > { %v1472_v29 = vmul.f32 0.5, %v1471_v24 }
 0x28a   : > { %v1473_v15 = vsub.f32 1.5, %v1472_v29 }
 0x28b   : > { %v2500_v20 = vpop.eup %2499 }
 0x28c   : > { %v1480_v14 = vmul.f32 %v2500_v20, %v1408_v25  ;;  %v1474_v12 = vmul.f32 %v2498_v36, %v1473_v15  ;;  %vm1486_vm3 = vweird.f32 %v2500_v20  ;;  %v1731_v7 = vpop.f32.mrf.mxu3 }
 0x28d   : > { %vm1487_vm5 = vmor %vm1485_vm4, %vm1486_vm3  ;;  %v1802_v57 = vmul.f32 0.03125, %v1731_v7 }
 0x28e   : > { %v1481_v41 = vmul.f32 %v2500_v20, %v1480_v14  ;;  %v1478_v40 = vsel %vm1477_vm15, %v2498_v36, %v1474_v12 }
 0x28f   : > { %2310 = vmatmul.msk.f32.gmra.mxu1 %vm599_vm2, %v1478_v40  ;;  %1794 = vmatmul.f32.gmra.mxu0 %v1758_v1 }
 0x290   : > { %v1482_v22 = vmul.f32 0.5, %v1481_v41  ;;  %v1818_v41 = vmul.f32 %v1802_v57, %v1802_v57 }
 0x292   : > { %v1483_v5 = vsub.f32 1.5, %v1482_v22 }
 0x294   : > { %v1176_v47 = vpop.f32.mrf.mxu0  ;;  %v1484_v4 = vmul.f32 %v2500_v20, %v1483_v5  ;;  %v1734_v53 = vpop.f32.mrf.mxu3 }
 0x295   : > { %v1194_v35 = vmul.f32 %v1186_v21, %v1176_v47  ;;  %v1803_v48 = vmul.f32 0.03125, %v1734_v53 }
 0x296   : > { %v1488_v44 = vsel %vm1487_vm5, %v2500_v20, %v1484_v4 }
 0x297   : > { %v1202_v45 = vmul.f32 %v3317_v17, %v1194_v35  ;;  %2311 = vmatmul.msk.f32.gmra.mxu1 %vm599_vm2, %v1488_v44  ;;  %1797 = vmatmul.f32.gmra.mxu0 %v1759_v3 }
 0x299   : > { %v1210_v33 = vadd.f32 %v3324_v39, %v1202_v45  ;;  %v1819_v45 = vmul.f32 %v1803_v48, %v1803_v48 }
 0x29b   : > { %2269 = vst [vmem:[%s3339_s22 + $0xe8] sm:$0xff] %v1210_v33 }
 0x29c   : > { %v1530_v59 = vpop.f32.mrf.mxu0  ;;  %v1737_v51 = vpop.f32.mrf.mxu3 }
 0x29d   : > { %v1804_v61 = vmul.f32 0.03125, %v1737_v51  ;;  %v1619_v50 = vsub.f32 %v3287_v27, %v1530_v59 }
 0x29f   : > { %2345 = vmatmul.msk.f32.vlgmr.msra.gmra.mxu1 %vm599_vm2, %v1801_v63 }
 0x2a4   : > { %v1533_v0 = vpop.f32.mrf.mxu0  ;;  %v1740_v23 = vpop.f32.mrf.mxu3 }
 0x2a5   : > { %v3555_v11 = vmul.f32 0.03125, %v1740_v23  ;;  %v1620_v12 = vsub.f32 %v3307_v8, %v1533_v0 }
 0x2a7   : > { %2346 = vmatmul.msk.f32.gmra.mxu1 %vm599_vm2, %v1802_v57 }
 0x2ac   : > { %v1536_v55 = vpop.f32.mrf.mxu0  ;;  %v1743_v58 = vpop.f32.mrf.mxu3 }
 0x2ad   : > { %v3561_v52 = vmul.f32 0.03125, %v1743_v58  ;;  %v1621_v44 = vsub.f32 %v3334_v38, %v1536_v55  ;;  %v1820_v55 = vmul.f32 %v1804_v61, %v1804_v61 }
 0x2af   : > { %2347 = vmatmul.msk.f32.gmra.mxu1 %vm599_vm2, %v1803_v48 }
 0x2b4   : > { %v3552_v9 = vpop.f32.mrf.mxu0  ;;  %v1746_v56 = vpop.f32.mrf.mxu3 }
 0x2b5   : > { %v3567_v62 = vmul.f32 0.03125, %v1746_v56  ;;  %v1622_v48 = vsub.f32 %v3351_v54, %v3552_v9 }
 0x2b7   : > { %2348 = vmatmul.msk.f32.gmra.mxu1 %vm599_vm2, %v1804_v61 }
 0x2bc   : > { %v3557_v6 = vpop.f32.mrf.mxu0  ;;  %v1749_v36 = vpop.f32.mrf.mxu3 }
 0x2bd   : > { %v3573_v25 = vmul.f32 0.03125, %v1749_v36 }
 0x2bf   : > { %2349 = vmatmul.msk.f32.gmra.mxu1 %vm599_vm2, %v3555_v11 }
 0x2c4   : > { %v3563_v26 = vpop.f32.mrf.mxu0 }
 0x2c7   : > { %2350 = vmatmul.msk.f32.gmra.mxu1 %vm599_vm2, %v3561_v52 }
 0x2cc   : > { %v3569_v60 = vpop.f32.mrf.mxu0 }
 0x2cf   : > { %2351 = vmatmul.msk.f32.gmra.mxu1 %vm599_vm2, %v3567_v62 }
 0x2d4   : > { %v3575_v13 = vpop.f32.mrf.mxu0 }
 0x2d7   : > { %2352 = vmatmul.msk.f32.gmra.mxu1 %vm599_vm2, %v3573_v25 }
 0x2dc   : > { %v1595_v24 = vpop.f32.mrf.mxu1  ;;  %v1777_v34 = vpop.f32.mrf.mxu0 }
 0x2dd   : > { %v1627_v29 = vmul.f32 %v1619_v50, %v1595_v24  ;;  %v1809_v15 = vmul.f32 0.03125, %v1777_v34 }
 0x2df   : > { %v1635_v10 = vmul.f32 %v3317_v17, %v1627_v29  ;;  %v1825_v20 = vsub.f32 %v1809_v15, %v1817_v30 }
 0x2e1   : > { %v1643_v1 = vadd.f32 %v3324_v39, %v1635_v10  ;;  %v1833_v14 = vmax.f32 %v1825_v20, 0.0 }
 0x2e3   : > { %2312 = vst [vmem:[%s3339_s22 + $0x10] sm:$0xff] %v1643_v1  ;;  %v1841_v40 = vadd.f32 1e-05, %v1833_v14 }
 0x2e4   : > { %v1598_v22 = vpop.f32.mrf.mxu1  ;;  %v1780_v5 = vpop.f32.mrf.mxu0 }
 0x2e5   : > { %2501 = vrsqrt.f32 %v1841_v40  ;;  %v1628_v27 = vmul.f32 %v1620_v12, %v1598_v22  ;;  %v1810_v21 = vmul.f32 0.03125, %v1780_v5  ;;  %vm1855_vm7 = vweird.f32 %v1841_v40 }
 0x2e6   : > { %v1623_v5 = vsub.f32 %v3368_v18, %v3557_v6 }
 0x2e7   : > { %v1636_v3 = vmul.f32 %v3317_v17, %v1628_v27  ;;  %v1826_v47 = vsub.f32 %v1810_v21, %v1818_v41  ;;  %v1821_v27 = vmul.f32 %v3555_v11, %v3555_v11 }
 0x2e9   : > { %v1644_v4 = vadd.f32 %v3324_v39, %v1636_v3  ;;  %v1834_v7 = vmax.f32 %v1826_v47, 0.0 }
 0x2eb   : > { %v2502_v35 = vpop.eup %2501  ;;  %2313 = vst [vmem:[%s3339_s22 + $0x30] sm:$0xff] %v1644_v4  ;;  %v1842_v8 = vadd.f32 1e-05, %v1834_v7 }
 0x2ec   : > { %v1850_v33 = vmul.f32 %v2502_v35, %v1841_v40  ;;  %v1601_v63 = vpop.f32.mrf.mxu1  ;;  %v1783_v59 = vpop.f32.mrf.mxu0  ;;  %vm1856_vm6 = vweird.f32 %v2502_v35 }
 0x2ed   : > { %2503 = vrsqrt.f32 %v1842_v8  ;;  %v1629_v53 = vmul.f32 %v1621_v44, %v1601_v63  ;;  %v1811_v57 = vmul.f32 0.03125, %v1783_v59  ;;  %vm1857_vm8 = vmor %vm1855_vm7, %vm1856_vm6  ;;  %vm1865_vm9 = vweird.f32 %v1842_v8 }
 0x2ee   : > { %v1851_v0 = vmul.f32 %v2502_v35, %v1850_v33 }
 0x2ef   : > { %v1637_v51 = vmul.f32 %v3317_v17, %v1629_v53  ;;  %v1827_v23 = vsub.f32 %v1811_v57, %v1819_v45 }
 0x2f0   : > { %v1852_v58 = vmul.f32 0.5, %v1851_v0  ;;  %v1822_v0 = vmul.f32 %v3561_v52, %v3561_v52 }
 0x2f1   : > { %v1645_v56 = vadd.f32 %v3324_v39, %v1637_v51  ;;  %v1835_v36 = vmax.f32 %v1827_v23, 0.0 }
 0x2f2   : > { %v1853_v50 = vsub.f32 1.5, %v1852_v58 }
 0x2f3   : > { %v2504_v38 = vpop.eup %2503  ;;  %2314 = vst [vmem:[%s3339_s22 + $0x50] sm:$0xff] %v1645_v56  ;;  %v1843_v30 = vadd.f32 1e-05, %v1835_v36 }
 0x2f4   : > { %v1860_v24 = vmul.f32 %v2504_v38, %v1842_v8  ;;  %v1604_v34 = vpop.f32.mrf.mxu1  ;;  %v1786_v29 = vpop.f32.mrf.mxu0  ;;  %v1854_v15 = vmul.f32 %v2502_v35, %v1853_v50  ;;  %vm1866_vm1 = vweird.f32 %v2504_v38  ;;  %v1624_v8 = vsub.f32 %v3383_v46, %v3563_v26 }
 0x2f5   : > { %2505 = vrsqrt.f32 %v1843_v30  ;;  %v1630_v10 = vmul.f32 %v1622_v48, %v1604_v34  ;;  %v1812_v20 = vmul.f32 0.03125, %v1786_v29  ;;  %vm1867_vm10 = vmor %vm1865_vm9, %vm1866_vm1  ;;  %vm1875_vm11 = vweird.f32 %v1843_v30 }
 0x2f6   : > { %v1861_v1 = vmul.f32 %v2504_v38, %v1860_v24  ;;  %v1858_v14 = vsel %vm1857_vm8, %v2502_v35, %v1854_v15 }
 0x2f7   : > { %v1638_v12 = vmul.f32 %v3317_v17, %v1630_v10  ;;  %v1828_v41 = vsub.f32 %v1812_v20, %v1820_v55  ;;  %2354 = vmatmul.msk.f32.vlgmr.msra.gmra.mxu2 %vm599_vm2, %v1858_v14  ;;  %v1823_v10 = vmul.f32 %v3567_v62, %v3567_v62 }
 0x2f8   : > { %v1862_v54 = vmul.f32 0.5, %v1861_v1 }
 0x2f9   : > { %v1646_v61 = vadd.f32 %v3324_v39, %v1638_v12  ;;  %v1836_v9 = vmax.f32 %v1828_v41, 0.0 }
 0x2fa   : > { %v1863_v40 = vsub.f32 1.5, %v1862_v54 }
 0x2fb   : > { %v2506_v22 = vpop.eup %2505  ;;  %2315 = vst [vmem:[%s3339_s22 + $0x70] sm:$0xff] %v1646_v61  ;;  %v1844_v21 = vadd.f32 1e-05, %v1836_v9 }
 0x2fc   : > { %v1870_v3 = vmul.f32 %v2506_v22, %v1843_v30  ;;  %v1607_v47 = vpop.f32.mrf.mxu1  ;;  %v1789_v4 = vpop.f32.mrf.mxu0  ;;  %v1864_v7 = vmul.f32 %v2504_v38, %v1863_v40  ;;  %vm1876_vm0 = vweird.f32 %v2506_v22  ;;  %v1625_v30 = vsub.f32 %v3395_v19, %v3569_v60  ;;  %v3620_v19 = vld [vmem:[%s3713_s5] ss:$0 sm:$0xff] }
 0x2fd   : > { %2507 = vrsqrt.f32 %v1844_v21  ;;  %v1631_v35 = vmul.f32 %v1623_v5, %v1607_v47  ;;  %v1813_v44 = vmul.f32 0.03125, %v1789_v4  ;;  %vm1877_vm12 = vmor %vm1875_vm11, %vm1876_vm0  ;;  %vm1885_vm14 = vweird.f32 %v1844_v21  ;;  %v3627_v40 = vld [vmem:[%s3714_s6] ss:$0 sm:$0xff] }
 0x2fe   : > { %v1871_v45 = vmul.f32 %v2506_v22, %v1870_v3  ;;  %v1868_v33 = vsel %vm1867_vm10, %v2504_v38, %v1864_v7  ;;  %v1626_v3 = vsub.f32 %v3408_v31, %v3575_v13  ;;  %v1824_v47 = vmul.f32 %v3573_v25, %v3573_v25 }
 0x2ff   : > { %v1639_v63 = vmul.f32 %v3317_v17, %v1631_v35  ;;  %v1829_v18 = vsub.f32 %v1813_v44, %v1821_v27  ;;  %2355 = vmatmul.msk.f32.gmra.mxu2 %vm599_vm2, %v1868_v33 }
 0x300   : > { %v1872_v11 = vmul.f32 0.5, %v1871_v45 }
 0x301   : > { %v1647_v6 = vadd.f32 %v3324_v39, %v1639_v63  ;;  %v1837_v59 = vmax.f32 %v1829_v18, 0.0 }
 0x302   : > { %v1873_v53 = vsub.f32 1.5, %v1872_v11 }
 0x303   : > { %v2508_v57 = vpop.eup %2507  ;;  %2316 = vst [vmem:[%s3339_s22 + $0x90] sm:$0xff] %v1647_v6  ;;  %v1845_v51 = vadd.f32 1e-05, %v1837_v59 }
 0x304   : > { %v1880_v23 = vmul.f32 %v2508_v57, %v1844_v21  ;;  %v1610_v58 = vpop.f32.mrf.mxu1  ;;  %v1792_v56 = vpop.f32.mrf.mxu0  ;;  %v1874_v36 = vmul.f32 %v2506_v22, %v1873_v53  ;;  %vm1886_vm13 = vweird.f32 %v2508_v57 }
 0x305   : > { %2509 = vrsqrt.f32 %v1845_v51  ;;  %v1632_v50 = vmul.f32 %v1624_v8, %v1610_v58  ;;  %v1814_v38 = vmul.f32 0.03125, %v1792_v56  ;;  %vm1887_vm15 = vmor %vm1885_vm14, %vm1886_vm13  ;;  %vm1895_vm4 = vweird.f32 %v1845_v51 }
 0x306   : > { %v1881_v48 = vmul.f32 %v2508_v57, %v1880_v23  ;;  %v1878_v55 = vsel %vm1877_vm12, %v2506_v22, %v1874_v36 }
 0x307   : > { %v1640_v24 = vmul.f32 %v3317_v17, %v1632_v50  ;;  %v1830_v46 = vsub.f32 %v1814_v38, %v1822_v0  ;;  %2356 = vmatmul.msk.f32.gmra.mxu2 %vm599_vm2, %v1878_v55 }
 0x308   : > { %v1882_v52 = vmul.f32 0.5, %v1881_v48 }
 0x309   : > { %v1648_v26 = vadd.f32 %v3324_v39, %v1640_v24  ;;  %v1838_v34 = vmax.f32 %v1830_v46, 0.0 }
 0x30a   : > { %v1883_v29 = vsub.f32 1.5, %v1882_v52 }
 0x30b   : > { %v2510_v15 = vpop.eup %2509  ;;  %2317 = vst [vmem:[%s3339_s22 + $0xb0] sm:$0xff] %v1648_v26  ;;  %v1846_v20 = vadd.f32 1e-05, %v1838_v34 }
 0x30c   : > { %v1890_v1 = vmul.f32 %v2510_v15, %v1845_v51  ;;  %v1613_v17 = vpop.f32.mrf.mxu1  ;;  %v1795_v14 = vpop.f32.mrf.mxu0  ;;  %v1884_v12 = vmul.f32 %v2508_v57, %v1883_v29  ;;  %vm1896_vm3 = vweird.f32 %v2510_v15 }
 0x30d   : > { %2511 = vrsqrt.f32 %v1846_v20  ;;  %v1633_v41 = vmul.f32 %v1625_v30, %v1613_v17  ;;  %v1815_v39 = vmul.f32 0.03125, %v1795_v14  ;;  %vm1897_vm5 = vmor %vm1895_vm4, %vm1896_vm3  ;;  %vm1905_vm7 = vweird.f32 %v1846_v20 }
 0x30e   : > { %v1891_v54 = vmul.f32 %v2510_v15, %v1890_v1  ;;  %v1888_v61 = vsel %vm1887_vm15, %v2508_v57, %v1884_v12 }
 0x30f   : > { %v1641_v62 = vmul.f32 %v3620_v19, %v1633_v41  ;;  %v1831_v60 = vsub.f32 %v1815_v39, %v1823_v10  ;;  %2357 = vmatmul.msk.f32.gmra.mxu2 %vm599_vm2, %v1888_v61 }
 0x310   : > { %v1892_v9 = vmul.f32 0.5, %v1891_v54 }
 0x311   : > { %v1649_v22 = vadd.f32 %v3627_v40, %v1641_v62  ;;  %v1839_v5 = vmax.f32 %v1831_v60, 0.0 }
 0x312   : > { %v1893_v27 = vsub.f32 1.5, %v1892_v9 }
 0x313   : > { %v2512_v21 = vpop.eup %2511  ;;  %2318 = vst [vmem:[%s3339_s22 + $0xd0] sm:$0xff] %v1649_v22  ;;  %v1847_v4 = vadd.f32 1e-05, %v1839_v5 }
 0x314   : > { %v1900_v7 = vmul.f32 %v2512_v21, %v1846_v20  ;;  %v1616_v35 = vpop.f32.mrf.mxu1  ;;  %v1798_v44 = vpop.f32.mrf.mxu0  ;;  %v1894_v45 = vmul.f32 %v2510_v15, %v1893_v27  ;;  %vm1906_vm6 = vweird.f32 %v2512_v21 }
 0x315   : > { %2513 = vrsqrt.f32 %v1847_v4  ;;  %v1634_v33 = vmul.f32 %v1626_v3, %v1616_v35  ;;  %v1816_v63 = vmul.f32 0.03125, %v1798_v44  ;;  %vm1907_vm8 = vmor %vm1905_vm7, %vm1906_vm6  ;;  %vm1915_vm9 = vweird.f32 %v1847_v4 }
 0x316   : > { %v1901_v18 = vmul.f32 %v2512_v21, %v1900_v7  ;;  %v1898_v11 = vsel %vm1897_vm5, %v2510_v15, %v1894_v45 }
 0x317   : > { %v1642_v6 = vmul.f32 %v3620_v19, %v1634_v33  ;;  %v1832_v31 = vsub.f32 %v1816_v63, %v1824_v47  ;;  %2358 = vmatmul.msk.f32.gmra.mxu2 %vm599_vm2, %v1898_v11 }
 0x318   : > { %v1902_v25 = vmul.f32 0.5, %v1901_v18 }
 0x319   : > { %v1650_v13 = vadd.f32 %v3627_v40, %v1642_v6  ;;  %v1840_v59 = vmax.f32 %v1832_v31, 0.0 }
 0x31a   : > { %v1903_v53 = vsub.f32 1.5, %v1902_v25 }
 0x31b   : > { %v2514_v57 = vpop.eup %2513  ;;  %2319 = vst [vmem:[%s3339_s22 + $0xf0] sm:$0xff] %v1650_v13  ;;  %v1848_v8 = vadd.f32 1e-05, %v1840_v59 }
 0x31c   : > { %v1910_v0 = vmul.f32 %v2514_v57, %v1847_v4  ;;  %v1904_v51 = vmul.f32 %v2512_v21, %v1903_v53  ;;  %vm1916_vm1 = vweird.f32 %v2514_v57  ;;  %v1970_v29 = vpop.f32.mrf.mxu1 }
 0x31d   : > { %2515 = vrsqrt.f32 %v1848_v8  ;;  %vm1917_vm10 = vmor %vm1915_vm9, %vm1916_vm1  ;;  %vm1925_vm11 = vweird.f32 %v1848_v8  ;;  %v2059_v30 = vsub.f32 %v3488_v16, %v1970_v29 }
 0x31e   : > { %v1911_v23 = vmul.f32 %v2514_v57, %v1910_v0  ;;  %v1908_v58 = vsel %vm1907_vm8, %v2512_v21, %v1904_v51 }
 0x31f   : > { %2359 = vmatmul.msk.f32.gmra.mxu2 %vm599_vm2, %v1908_v58 }
 0x320   : > { %v1912_v56 = vmul.f32 0.5, %v1911_v23 }
 0x322   : > { %v1913_v36 = vsub.f32 1.5, %v1912_v56 }
 0x323   : > { %v2516_v50 = vpop.eup %2515 }
 0x324   : > { %v1920_v38 = vmul.f32 %v2516_v50, %v1848_v8  ;;  %v1914_v48 = vmul.f32 %v2514_v57, %v1913_v36  ;;  %vm1926_vm0 = vweird.f32 %v2516_v50  ;;  %v1973_v15 = vpop.f32.mrf.mxu1 }
 0x325   : > { %vm1927_vm12 = vmor %vm1925_vm11, %vm1926_vm0  ;;  %v2060_v12 = vsub.f32 %v3496_v2, %v1973_v15 }
 0x326   : > { %v1921_v55 = vmul.f32 %v2516_v50, %v1920_v38  ;;  %v1918_v24 = vsel %vm1917_vm10, %v2514_v57, %v1914_v48 }
 0x327   : > { %2360 = vmatmul.msk.f32.gmra.mxu2 %vm599_vm2, %v1918_v24 }
 0x328   : > { %v1922_v46 = vmul.f32 0.5, %v1921_v55 }
 0x32a   : > { %v1923_v52 = vsub.f32 1.5, %v1922_v46 }
 0x32c   : > { %v1924_v26 = vmul.f32 %v2516_v50, %v1923_v52  ;;  %v1976_v1 = vpop.f32.mrf.mxu1 }
 0x32d   : > { %v2061_v16 = vsub.f32 %v3502_v42, %v1976_v1 }
 0x32e   : > { %v1928_v34 = vsel %vm1927_vm12, %v2516_v50, %v1924_v26 }
 0x32f   : > { %2361 = vmatmul.msk.f32.gmra.mxu2 %vm599_vm2, %v1928_v34 }
 0x334   : > { %v1979_v61 = vpop.f32.mrf.mxu1 }
 0x335   : > { %v2062_v27 = vsub.f32 %v3510_v28, %v1979_v61 }
 0x33c   : > { %v1982_v2 = vpop.f32.mrf.mxu1 }
 0x33d   : > { %v2063_v42 = vsub.f32 %v3517_v43, %v1982_v2 }
 0x344   : > { %v1985_v7 = vpop.f32.mrf.mxu1 }
 0x345   : > { %v2064_v28 = vsub.f32 %v3526_v49, %v1985_v7 }
 0x34c   : > { %v1988_v11 = vpop.f32.mrf.mxu1 }
 0x34d   : > { %v2065_v31 = vsub.f32 %v3533_v37, %v1988_v11 }
 0x354   : > { %v1991_v49 = vpop.f32.mrf.mxu1 }
 0x355   : > { %v2066_v57 = vsub.f32 %v3539_v32, %v1991_v49 }
 0x37a   : > { %v2035_v10 = vpop.f32.mrf.mxu2 }
 0x37b   : > { %v2067_v20 = vmul.f32 %v2059_v30, %v2035_v10 }
 0x37d   : > { %v2075_v17 = vmul.f32 %v3620_v19, %v2067_v20 }
 0x37f   : > { %v2083_v14 = vadd.f32 %v3627_v40, %v2075_v17 }
 0x381   : > { %2362 = vst [vmem:[%s3339_s22 + $0x18] sm:$0xff] %v2083_v14 }
 0x382   : > { %v2038_v41 = vpop.f32.mrf.mxu2 }
 0x383   : > { %v2068_v39 = vmul.f32 %v2060_v12, %v2038_v41 }
 0x385   : > { %v2076_v54 = vmul.f32 %v3620_v19, %v2068_v39 }
 0x387   : > { %v2084_v62 = vadd.f32 %v3627_v40, %v2076_v54 }
 0x389   : > { %2363 = vst [vmem:[%s3339_s22 + $0x38] sm:$0xff] %v2084_v62 }
 0x38a   : > { %v2041_v60 = vpop.f32.mrf.mxu2 }
 0x38b   : > { %v2069_v9 = vmul.f32 %v2061_v16, %v2041_v60 }
 0x38d   : > { %v2077_v22 = vmul.f32 %v3620_v19, %v2069_v9 }
 0x38f   : > { %v2085_v5 = vadd.f32 %v3627_v40, %v2077_v22 }
 0x391   : > { %2364 = vst [vmem:[%s3339_s22 + $0x58] sm:$0xff] %v2085_v5 }
 0x392   : > { %v2044_v21 = vpop.f32.mrf.mxu2 }
 0x393   : > { %v2070_v3 = vmul.f32 %v2062_v27, %v2044_v21 }
 0x395   : > { %v2078_v47 = vmul.f32 %v3620_v19, %v2070_v3 }
 0x397   : > { %v2086_v4 = vadd.f32 %v3627_v40, %v2078_v47 }
 0x399   : > { %2365 = vst [vmem:[%s3339_s22 + $0x78] sm:$0xff] %v2086_v4 }
 0x39a   : > { %v2047_v35 = vpop.f32.mrf.mxu2 }
 0x39b   : > { %v2071_v44 = vmul.f32 %v2063_v42, %v2047_v35 }
 0x39d   : > { %v2079_v45 = vmul.f32 %v3620_v19, %v2071_v44 }
 0x39f   : > { %v2087_v33 = vadd.f32 %v3627_v40, %v2079_v45 }
 0x3a1   : > { %2366 = vst [vmem:[%s3339_s22 + $0x98] sm:$0xff] %v2087_v33 }
 0x3a2   : > { %v2050_v63 = vpop.f32.mrf.mxu2 }
 0x3a3   : > { %v2072_v18 = vmul.f32 %v2064_v28, %v2050_v63 }
 0x3a5   : > { %v2080_v6 = vmul.f32 %v3620_v19, %v2072_v18 }
 0x3a7   : > { %v2088_v43 = vadd.f32 %v3627_v40, %v2080_v6 }
 0x3a9   : > { %2367 = vst [vmem:[%s3339_s22 + $0xb8] sm:$0xff] %v2088_v43 }
 0x3aa   : > { %v2053_v25 = vpop.f32.mrf.mxu2 }
 0x3ab   : > { %v2073_v13 = vmul.f32 %v2065_v31, %v2053_v25 }
 0x3ad   : > { %v2081_v59 = vmul.f32 %v3620_v19, %v2073_v13 }
 0x3af   : > { %v2089_v53 = vadd.f32 %v3627_v40, %v2081_v59 }
 0x3b1   : > { %2368 = vst [vmem:[%s3339_s22 + $0xd8] sm:$0xff] %v2089_v53 }
 0x3b2   : > { %v2056_v37 = vpop.f32.mrf.mxu2 }
 0x3b3   : > { %v2074_v8 = vmul.f32 %v2066_v57, %v2056_v37 }
 0x3b5   : > { %v2082_v0 = vmul.f32 %v3620_v19, %v2074_v8 }
 0x3b7   : > { %v2090_v51 = vadd.f32 %v3627_v40, %v2082_v0 }
 0x3b9   : > { %2369 = vst [vmem:[%s3339_s22 + $0xf8] sm:$0xff] %v2090_v51 }
 0x3ba   : > { %2554 = shalt.err (!%p2551_p3)
}
 0x3bb   : > { %s2591_s15 = smov 128   ;;  %s2592_s22 = smov 8  }
 0x3bc   : > { %2410 = dma.vmem_to_hbm [thread:$0]  (%p2671_p5), %s2115_s9, 4096, %s2117_s13, %s2101_s28, %s2591_s15, %s2591_s15, %s2592_s22  }
 0x3bd PF: > { %p2416_p4 = scmp.ge.s32.totalorder %s2589_s27, 2  ;;  %s2131_s23 = sand.u32 1, %s2577_s24  }
 0x3be   : > { %s2132_s29 = scalar_lea.sflag [#allocation3], %s2131_s23 }
 0x3bf   : > { %p2413_p7 = pnand %p2416_p4, %p2675_p6 }
 0x3c1   : > { %p2414_p8 = pneg %p2413_p7 }
 0x3c3   : > { %2572 = dma.done.wait (%p2414_p8), %s2132_s29, 4096  }
 0x3c4   : > { %2574 = vsyncadd (%p2414_p8), %s2132_s29, 4294963200  ;;  %p17_p9 = scmp.ge.s32.totalorder %s2658_s30, 4   ;;  %s3720_s24 = smov %s2581_s25 }
 0x3c5   : > { %s3721_s25 = smov %s2585_s26  ;;  %s3722_s26 = smov %s2669_s10 }
 0x3c6   : > { %s3723_s27 = smov %s2658_s30  ;;  %19 = sbr.rel (!%p17_p9) target bundleno = 3 (0x3), region = 92 }
 0x3cb   :  { %2138 = vsyncpa [#allocation3], 1 }
 0x3cc   :  { %2140 = vsyncpa [#allocation3 + $0x1], 1 }

</bundles_post_ra>
